<compile_context>
chip_gen: v7x
topology: tpu7x:2x2x1
jax: 0.10.0
libtpu: 0.0.40
codegen_flags: <defaults>
</compile_context>

<pallas_src>
import jax
import jax.numpy as jnp
from jax.experimental import pallas as pl
from jax.experimental.pallas import tpu as pltpu


# ---------------------------------------------------------------------------
# Kernel 1: GRU recurrence.
# ---------------------------------------------------------------------------
def make_gru_kernel(T_total, T_chunk, H):
    def kernel(emb_ref, h0_ref, w_ih_ref, w_hh_ref, b_x_ref, b_hn_ref,
               hs_ref, h_final_ref, gir_s, giz_s, gin_s):
        c = pl.program_id(0)
        Tc, B, E = emb_ref.shape

        @pl.when(c == 0)
        def _():
            h_final_ref[...] = h0_ref[...].astype(jnp.float32)

        w_hh = w_hh_ref[...]                                    # (H, 3H), resident

        # --- hoisted input projection for the whole chunk (single MXU push) ---
        gi = jnp.dot(emb_ref[...].reshape(Tc * B, E), w_ih_ref[...],
                     preferred_element_type=jnp.float32) + b_x_ref[...]   # (Tc*B, 3H)
        # Pre-split gates once, outside the serial loop, so no per-step lane
        # slicing of gi is needed.
        # TODO(synk): pad H to a multiple of 128 for real model sizes so the gh
        # gate slices below are lane-aligned as well.
        gir_s[...] = gi[:, :H].reshape(Tc, B, H)
        giz_s[...] = gi[:, H:2 * H].reshape(Tc, B, H)
        gin_s[...] = gi[:, 2 * H:].reshape(Tc, B, H)
        # b_hn broadcast hoisted out of the loop (it must stay inside r*(...),
        # matching PyTorch GRU semantics).
        b_hn = jnp.broadcast_to(b_hn_ref[...], (B, H))

        def step(t, h):
            gh = jnp.dot(h, w_hh, preferred_element_type=jnp.float32)    # (B, 3H)
            r = jax.nn.sigmoid(gir_s[t] + gh[:, :H])
            z = jax.nn.sigmoid(giz_s[t] + gh[:, H:2 * H])
            n = jnp.tanh(gin_s[t] + r * (gh[:, 2 * H:] + b_hn))
            h_new = n + z * (h - n)                      # == (1-z)*n + z*h
            # Direct (B, T, H)-layout store of this timestep's hidden state.
            hs_ref[:, pl.ds(t, 1), :] = h_new[:, None, :].astype(hs_ref.dtype)
            return h_new

        h = h_final_ref[...]                             # carried f32 hidden state
        if T_total % T_chunk == 0:
            h = jax.lax.fori_loop(0, T_chunk, step, h, unroll=(T_chunk <= 16))
        else:                                            # ragged last chunk
            steps = jnp.minimum(T_chunk, T_total - c * T_chunk)
            h = jax.lax.fori_loop(0, steps, step, h)
        h_final_ref[...] = h

    return kernel


# ---------------------------------------------------------------------------
# Kernel 2: output Linear (vocab projection), tiled over V.
# ---------------------------------------------------------------------------
def output_projection_kernel(hs_ref, w_out_ref, b_out_ref, out_ref):
    B, T, H = hs_ref.shape
    # bf16 operands on the MXU, f32 accumulate, f32 bias / output.
    y = jnp.dot(hs_ref[...].reshape(B * T, H).astype(jnp.bfloat16), w_out_ref[...],
                preferred_element_type=jnp.float32) + b_out_ref[...]
    out_ref[...] = y.reshape(B, T, -1).astype(out_ref.dtype)


def _pick_v_tile(B, T, H, V, vmem_budget_bytes=24 * 1024 * 1024):
    """Largest lane-dense V tile that fits the VMEM budget; even tile count
    preferred (v7x megacore has 2 TensorCores sharing the parallel axis)."""
    def fits(vt):
        need = (2 * H * vt * 2            # bf16 W_out tile (double-buffered)
                + 2 * vt * 4              # f32 bias tile
                + 2 * B * T * vt * 4      # f32 logits tile
                + 2 * B * T * H * 4)      # grid-invariant hs block
        return need <= vmem_budget_bytes

    vt = 128
    for cand in (2048, 1024, 512, 256, 128):
        if fits(cand):
            vt = cand
            break
    v_pad = ((V + 127) // 128) * 128
    vt = min(vt, v_pad)
    # Nudge toward an even number of grid points (keep tiles >= 256 wide).
    while vt > 256 and pl.cdiv(V, vt) % 2 == 1:
        vt -= 128
    return vt


# ---------------------------------------------------------------------------
# Wrapper: full DecoderRNN.forward(x, hidden) in eval mode.
# ---------------------------------------------------------------------------
def decoder_rnn_forward(x_tokens, hidden, params):
    H = params["w_hh"].shape[0]
    V = params["w_out"].shape[-1]

    # Embedding lookup (gather) stays in plain JAX; gathering on x.T yields the
    # (T, B, E) layout (t-major rows) directly.
    # TODO(synk): nn.Dropout(0.3) is identity in eval mode; training-mode dropout not implemented.
    emb_tbe = params["embedding"][x_tokens.T]            # (T, B, E) f32
    h0 = hidden[0]                                       # (B, H)
    T, B, E = emb_tbe.shape

    # Fold b_ih + b_hh for the r/z gates; keep b_hn separate (inside r*(...)).
    b_x = (params["b_ih"] + jnp.concatenate(
        [params["b_hh"][:, :2 * H], jnp.zeros((1, H), params["b_hh"].dtype)],
        axis=1)).astype(jnp.float32)                     # (1, 3H)
    b_hn = params["b_hh"][:, 2 * H:].astype(jnp.float32)  # (1, H)

    # ---- Kernel 1: serial GRU recurrence, T-chunked for VMEM (v7x: 64 MiB).
    T_CHUNK = T if T <= 128 else 128
    n_chunks = pl.cdiv(T, T_CHUNK)

    hs, h_final = pl.pallas_call(
        make_gru_kernel(T, T_CHUNK, H),
        out_shape=(
            jax.ShapeDtypeStruct((B, T, H), jnp.float32),   # hidden states (B,T,H)
            jax.ShapeDtypeStruct((B, H), jnp.float32),      # final hidden
        ),
        grid_spec=pltpu.PrefetchScalarGridSpec(
            num_scalar_prefetch=0,
            grid=(n_chunks,),
            in_specs=[
                pl.BlockSpec((T_CHUNK, B, E), lambda c: (c, 0, 0)),   # emb chunk
                pl.BlockSpec((B, H), lambda c: (0, 0)),               # h0
                pl.BlockSpec((E, 3 * H), lambda c: (0, 0)),           # W_ih
                pl.BlockSpec((H, 3 * H), lambda c: (0, 0)),           # W_hh
                pl.BlockSpec((1, 3 * H), lambda c: (0, 0)),           # folded r/z/n input bias
                pl.BlockSpec((1, H), lambda c: (0, 0)),               # b_hn
            ],
            out_specs=(
                pl.BlockSpec((B, T_CHUNK, H), lambda c: (0, c, 0)),   # hs chunk
                pl.BlockSpec((B, H), lambda c: (0, 0)),               # resident carry
            ),
            scratch_shapes=[pltpu.VMEM((T_CHUNK, B, H), jnp.float32)] * 3,
        ),
        compiler_params=pltpu.CompilerParams(
            dimension_semantics=("arbitrary",),            # serial recurrence
            vmem_limit_bytes=32 * 1024 * 1024),
    )(emb_tbe, h0, params["w_ih"].astype(jnp.float32),
      params["w_hh"].astype(jnp.float32), b_x, b_hn)

    # Pad T to a multiple of 8 so the projection always takes the single fused
    # (B*T, H) @ (H, v_tile) path (layout-trivial reshape, full MXU rows).
    T_p = ((T + 7) // 8) * 8
    hs_p = hs if T_p == T else jnp.pad(hs, ((0, 0), (0, T_p - T), (0, 0)))

    # ---- Kernel 2: output Linear, tiled over V (pl.cdiv handles ragged V).
    v_tile = _pick_v_tile(B, T_p, H, V)
    w_out = params["w_out"].astype(jnp.bfloat16)          # bandwidth-bound stream -> bf16
    b_out = params["b_out"].astype(jnp.float32)           # f32 bias / f32 logits

    logits = pl.pallas_call(
        output_projection_kernel,
        out_shape=jax.ShapeDtypeStruct((B, T_p, V), jnp.float32),
        grid_spec=pltpu.PrefetchScalarGridSpec(
            num_scalar_prefetch=0,
            grid=(pl.cdiv(V, v_tile),),
            in_specs=[
                # Grid-invariant hs block (tiny here; for big B*T on v7x consider
                # pipeline_mode=pl.Buffered(1) to avoid double-buffering it).
                pl.BlockSpec((B, T_p, H), lambda v: (0, 0, 0)),
                pl.BlockSpec((H, v_tile), lambda v: (0, v)),    # W_out tile (streamed)
                pl.BlockSpec((1, v_tile), lambda v: (0, v)),    # bias tile
            ],
            out_specs=pl.BlockSpec((B, T_p, v_tile), lambda v: (0, 0, v)),
        ),
        compiler_params=pltpu.CompilerParams(
            dimension_semantics=("parallel",),             # megacore-shardable
            vmem_limit_bytes=32 * 1024 * 1024),
    )(hs_p, w_out, b_out)

    if T_p != T:
        logits = logits[:, :T]
    return logits, h_final[None]                           # hidden: (1, B, H)


# ---------------------------------------------------------------------------
# Pure-JAX reference with PyTorch GRU semantics (gate order r, z, n).
# ---------------------------------------------------------------------------
def reference_forward(x_tokens, hidden, params):
    H = params["w_hh"].shape[0]
    emb = params["embedding"][x_tokens]                   # (B, T, E)
    h = hidden[0]
    outs = []
    for t in range(emb.shape[1]):
        xt = emb[:, t, :]
        gi = xt @ params["w_ih"] + params["b_ih"]
        gh = h @ params["w_hh"] + params["b_hh"]
        r = jax.nn.sigmoid(gi[:, :H] + gh[:, :H])
        z = jax.nn.sigmoid(gi[:, H:2 * H] + gh[:, H:2 * H])
        n = jnp.tanh(gi[:, 2 * H:] + r * gh[:, 2 * H:])
        h = (1.0 - z) * n + z * h
        outs.append(h @ params["w_out"] + params["b_out"])
    return jnp.stack(outs, axis=1), h[None]


def init_params(key, vocab_size, embedding_dim, hidden_dim):
    ks = jax.random.split(key, 7)
    bound = 1.0 / jnp.sqrt(hidden_dim)
    return {
        "embedding": jax.random.normal(ks[0], (vocab_size, embedding_dim), jnp.float32),
        # PyTorch GRU weights, gate order (r, z, n), stored transposed (x @ W) and
        # concatenated along the output dim for fused gate matmuls.
        "w_ih": jax.random.uniform(ks[1], (embedding_dim, 3 * hidden_dim), jnp.float32, -bound, bound),
        "w_hh": jax.random.uniform(ks[2], (hidden_dim, 3 * hidden_dim), jnp.float32, -bound, bound),
        "b_ih": jax.random.uniform(ks[3], (1, 3 * hidden_dim), jnp.float32, -bound, bound),
        "b_hh": jax.random.uniform(ks[4], (1, 3 * hidden_dim), jnp.float32, -bound, bound),
        "w_out": jax.random.uniform(ks[5], (hidden_dim, vocab_size), jnp.float32, -bound, bound),
        "b_out": jax.random.uniform(ks[6], (1, vocab_size), jnp.float32, -bound, bound),
    }


if __name__ == "__main__":
    VOCAB, EMB, HID = 1000, 32, 32     # non-128-divisible vocab -> exercises cdiv V tiling
    B, T = 2, 8

    root = jax.random.PRNGKey(0)
    k_par, k_tok, k_hid = jax.random.split(root, 3)

    params = init_params(k_par, VOCAB, EMB, HID)
    x_tokens = jax.random.randint(k_tok, (B, T), 0, VOCAB, dtype=jnp.int32)
    hidden0 = jax.random.normal(k_hid, (1, B, HID), jnp.float32)

    out, h_final = jax.jit(decoder_rnn_forward)(x_tokens, hidden0, params)
    out = jax.block_until_ready(out)
    h_final = jax.block_until_ready(h_final)

    ref_out, ref_h = reference_forward(x_tokens, hidden0, params)
    assert out.shape == (B, T, VOCAB) and h_final.shape == (1, B, HID)
    # GRU runs in f32 (tight tolerance on hidden); projection uses bf16 operands
    # with f32 accumulation (looser tolerance on logits).
    assert jnp.allclose(h_final, ref_h, atol=1e-4, rtol=1e-4)
    assert jnp.allclose(out, ref_out, atol=5e-2, rtol=5e-2)

    print("KERNEL_OK")
</pallas_src>

<mosaic_0001>
module attributes {stable_mosaic.version = 11 : i64} {
  func.func @output_projection_kernel(%arg0: i32, %arg1: memref<2x8x32xf32, #tpu.memory_space<vmem>>, %arg2: memref<32x896xbf16, #tpu.memory_space<vmem>>, %arg3: memref<1x896xf32, #tpu.memory_space<vmem>>, %arg4: memref<2x8x896xf32, #tpu.memory_space<vmem>>) attributes {dimension_semantics = [#tpu.dimension_semantics<parallel>], iteration_bounds = array<i64: 2>, scalar_prefetch = 0 : i64, scratch_operands = 0 : i64, tpu.core_type = #tpu.core_type<tc>, window_params = [{pipeline_mode = #tpu.pipeline_mode<synchronous>, transform_indices = @transform_0, window_bounds = array<i64: 2, 8, 32>}, {transform_indices = @transform_1, window_bounds = array<i64: 32, 896>}, {transform_indices = @transform_2, window_bounds = array<i64: 1, 896>}, {transform_indices = @transform_3, window_bounds = array<i64: 2, 8, 896>}]} {
    %c0 = arith.constant 0 : index
    %c0_0 = arith.constant 0 : index
    %c0_1 = arith.constant 0 : index
    %0 = vector.load %arg1[%c0, %c0_0, %c0_1] : memref<2x8x32xf32, #tpu.memory_space<vmem>>, vector<2x8x32xf32>
    %1 = vector.shape_cast %0 : vector<2x8x32xf32> to vector<16x32xf32>
    %2 = arith.truncf %1 : vector<16x32xf32> to vector<16x32xbf16>
    %c0_2 = arith.constant 0 : index
    %c0_3 = arith.constant 0 : index
    %3 = vector.load %arg2[%c0_2, %c0_3] : memref<32x896xbf16, #tpu.memory_space<vmem>>, vector<32x896xbf16>
    %cst = arith.constant dense<0.000000e+00> : vector<16x896xf32>
    %4 = tpu.matmul %2, %3, %cst {dimension_numbers = #tpu.dot_dimension_numbers<[1], [0], [0], [1], [0, 0, 1, 1], [], []>} : vector<16x32xbf16>, vector<32x896xbf16>, vector<16x896xf32> -> vector<16x896xf32>
    %c0_4 = arith.constant 0 : index
    %c0_5 = arith.constant 0 : index
    %5 = vector.load %arg3[%c0_4, %c0_5] : memref<1x896xf32, #tpu.memory_space<vmem>>, vector<1x896xf32>
    %6 = vector.broadcast %5 : vector<1x896xf32> to vector<16x896xf32>
    %7 = arith.addf %4, %6 : vector<16x896xf32>
    %8 = vector.shape_cast %7 : vector<16x896xf32> to vector<2x8x896xf32>
    %c0_6 = arith.constant 0 : index
    %c0_7 = arith.constant 0 : index
    %c0_8 = arith.constant 0 : index
    %9 = vector.load %arg4[%c0_6, %c0_7, %c0_8] : memref<2x8x896xf32, #tpu.memory_space<vmem>>, vector<2x8x896xf32>
    tpu.vector_store %arg4[%c0_6, %c0_7, %c0_8], %8 {strides = array<i32>} : memref<2x8x896xf32, #tpu.memory_space<vmem>>, vector<2x8x896xf32>,
    return
  }
  func.func @transform_0(%arg0: i32) -> (i32, i32, i32) {
    %c0_i32 = arith.constant 0 : i32
    %c0_i32_0 = arith.constant 0 : i32
    %c0_i32_1 = arith.constant 0 : i32
    %c0_i32_2 = arith.constant 0 : i32
    return %c0_i32, %c0_i32_0, %c0_i32_1 : i32, i32, i32
  }
  func.func @transform_1(%arg0: i32) -> (i32, i32) {
    %c0_i32 = arith.constant 0 : i32
    %c0_i32_0 = arith.constant 0 : i32
    return %c0_i32, %arg0 : i32, i32
  }
  func.func @transform_2(%arg0: i32) -> (i32, i32) {
    %c0_i32 = arith.constant 0 : i32
    %c0_i32_0 = arith.constant 0 : i32
    return %c0_i32, %arg0 : i32, i32
  }
  func.func @transform_3(%arg0: i32) -> (i32, i32, i32) {
    %c0_i32 = arith.constant 0 : i32
    %c0_i32_0 = arith.constant 0 : i32
    %c0_i32_1 = arith.constant 0 : i32
    return %c0_i32, %c0_i32_0, %arg0 : i32, i32, i32
  }
}

module attributes {stable_mosaic.version = 11 : i64} {
  func.func @kernel(%arg0: i32, %arg1: memref<8x2x32xf32, #tpu.memory_space<vmem>>, %arg2: memref<2x32xf32, #tpu.memory_space<vmem>>, %arg3: memref<32x96xf32, #tpu.memory_space<vmem>>, %arg4: memref<32x96xf32, #tpu.memory_space<vmem>>, %arg5: memref<1x96xf32, #tpu.memory_space<vmem>>, %arg6: memref<1x32xf32, #tpu.memory_space<vmem>>, %arg7: memref<2x8x32xf32, #tpu.memory_space<vmem>>, %arg8: memref<2x32xf32, #tpu.memory_space<vmem>>, %arg9: memref<8x2x32xf32, #tpu.memory_space<vmem>>, %arg10: memref<8x2x32xf32, #tpu.memory_space<vmem>>, %arg11: memref<8x2x32xf32, #tpu.memory_space<vmem>>) attributes {dimension_semantics = [#tpu.dimension_semantics<arbitrary>], iteration_bounds = array<i64: 1>, scalar_prefetch = 0 : i64, scratch_operands = 3 : i64, tpu.core_type = #tpu.core_type<tc>, window_params = [{transform_indices = @transform_0, window_bounds = array<i64: 8, 2, 32>}, {pipeline_mode = #tpu.pipeline_mode<synchronous>, transform_indices = @transform_1, window_bounds = array<i64: 2, 32>}, {pipeline_mode = #tpu.pipeline_mode<synchronous>, transform_indices = @transform_2, window_bounds = array<i64: 32, 96>}, {pipeline_mode = #tpu.pipeline_mode<synchronous>, transform_indices = @transform_3, window_bounds = array<i64: 32, 96>}, {pipeline_mode = #tpu.pipeline_mode<synchronous>, transform_indices = @transform_4, window_bounds = array<i64: 1, 96>}, {pipeline_mode = #tpu.pipeline_mode<synchronous>, transform_indices = @transform_5, window_bounds = array<i64: 1, 32>}, {transform_indices = @transform_6, window_bounds = array<i64: 2, 8, 32>}, {pipeline_mode = #tpu.pipeline_mode<synchronous>, transform_indices = @transform_7, window_bounds = array<i64: 2, 32>}]} {
    %c0_i32 = arith.constant 0 : i32
    %0 = arith.cmpi eq, %arg0, %c0_i32 : i32
    %1 = arith.extui %0 : i1 to i32
    %c0_i32_0 = arith.constant 0 : i32
    %2 = arith.cmpi ne, %1, %c0_i32_0 : i32
    scf.if %2 {
      %c0_113 = arith.constant 0 : index
      %c0_114 = arith.constant 0 : index
      %305 = vector.load %arg2[%c0_113, %c0_114] : memref<2x32xf32, #tpu.memory_space<vmem>>, vector<2x32xf32>
      %c0_115 = arith.constant 0 : index
      %c0_116 = arith.constant 0 : index
      %306 = vector.load %arg8[%c0_115, %c0_116] : memref<2x32xf32, #tpu.memory_space<vmem>>, vector<2x32xf32>
      tpu.vector_store %arg8[%c0_115, %c0_116], %305 {strides = array<i32>} : memref<2x32xf32, #tpu.memory_space<vmem>>, vector<2x32xf32>,
    } else {
    }
    %c0 = arith.constant 0 : index
    %c0_1 = arith.constant 0 : index
    %3 = vector.load %arg4[%c0, %c0_1] : memref<32x96xf32, #tpu.memory_space<vmem>>, vector<32x96xf32>
    %c0_2 = arith.constant 0 : index
    %c0_3 = arith.constant 0 : index
    %c0_4 = arith.constant 0 : index
    %4 = vector.load %arg1[%c0_2, %c0_3, %c0_4] : memref<8x2x32xf32, #tpu.memory_space<vmem>>, vector<8x2x32xf32>
    %5 = vector.shape_cast %4 : vector<8x2x32xf32> to vector<16x32xf32>
    %c0_5 = arith.constant 0 : index
    %c0_6 = arith.constant 0 : index
    %6 = vector.load %arg3[%c0_5, %c0_6] : memref<32x96xf32, #tpu.memory_space<vmem>>, vector<32x96xf32>
    %cst = arith.constant dense<0.000000e+00> : vector<16x96xf32>
    %7 = tpu.matmul %5, %6, %cst {dimension_numbers = #tpu.dot_dimension_numbers<[1], [0], [0], [1], [0, 0, 1, 1], [], []>} : vector<16x32xf32>, vector<32x96xf32>, vector<16x96xf32> -> vector<16x96xf32>
    %c0_7 = arith.constant 0 : index
    %c0_8 = arith.constant 0 : index
    %8 = vector.load %arg5[%c0_7, %c0_8] : memref<1x96xf32, #tpu.memory_space<vmem>>, vector<1x96xf32>
    %9 = vector.broadcast %8 : vector<1x96xf32> to vector<16x96xf32>
    %10 = arith.addf %7, %9 : vector<16x96xf32>
    %11 = vector.extract_strided_slice %10 {offsets = [0, 0], sizes = [16, 32], strides = [1, 1]} : vector<16x96xf32> to vector<16x32xf32>
    %12 = vector.shape_cast %11 : vector<16x32xf32> to vector<8x2x32xf32>
    %c0_9 = arith.constant 0 : index
    %c0_10 = arith.constant 0 : index
    %c0_11 = arith.constant 0 : index
    %13 = vector.load %arg9[%c0_9, %c0_10, %c0_11] : memref<8x2x32xf32, #tpu.memory_space<vmem>>, vector<8x2x32xf32>
    tpu.vector_store %arg9[%c0_9, %c0_10, %c0_11], %12 {strides = array<i32>} : memref<8x2x32xf32, #tpu.memory_space<vmem>>, vector<8x2x32xf32>,
    %14 = vector.extract_strided_slice %10 {offsets = [0, 32], sizes = [16, 32], strides = [1, 1]} : vector<16x96xf32> to vector<16x32xf32>
    %15 = vector.shape_cast %14 : vector<16x32xf32> to vector<8x2x32xf32>
    %c0_12 = arith.constant 0 : index
    %c0_13 = arith.constant 0 : index
    %c0_14 = arith.constant 0 : index
    %16 = vector.load %arg10[%c0_12, %c0_13, %c0_14] : memref<8x2x32xf32, #tpu.memory_space<vmem>>, vector<8x2x32xf32>
    tpu.vector_store %arg10[%c0_12, %c0_13, %c0_14], %15 {strides = array<i32>} : memref<8x2x32xf32, #tpu.memory_space<vmem>>, vector<8x2x32xf32>,
    %17 = vector.extract_strided_slice %10 {offsets = [0, 64], sizes = [16, 32], strides = [1, 1]} : vector<16x96xf32> to vector<16x32xf32>
    %18 = vector.shape_cast %17 : vector<16x32xf32> to vector<8x2x32xf32>
    %c0_15 = arith.constant 0 : index
    %c0_16 = arith.constant 0 : index
    %c0_17 = arith.constant 0 : index
    %19 = vector.load %arg11[%c0_15, %c0_16, %c0_17] : memref<8x2x32xf32, #tpu.memory_space<vmem>>, vector<8x2x32xf32>
    tpu.vector_store %arg11[%c0_15, %c0_16, %c0_17], %18 {strides = array<i32>} : memref<8x2x32xf32, #tpu.memory_space<vmem>>, vector<8x2x32xf32>,
    %c0_18 = arith.constant 0 : index
    %c0_19 = arith.constant 0 : index
    %20 = vector.load %arg6[%c0_18, %c0_19] : memref<1x32xf32, #tpu.memory_space<vmem>>, vector<1x32xf32>
    %21 = vector.shape_cast %20 : vector<1x32xf32> to vector<1x32xf32>
    %22 = vector.broadcast %21 : vector<1x32xf32> to vector<2x32xf32>
    %c0_20 = arith.constant 0 : index
    %c0_21 = arith.constant 0 : index
    %23 = vector.load %arg8[%c0_20, %c0_21] : memref<2x32xf32, #tpu.memory_space<vmem>>, vector<2x32xf32>
    %c0_i32_22 = arith.constant 0 : i32
    %cst_23 = arith.constant dense<0.000000e+00> : vector<2x96xf32>
    %24 = tpu.matmul %23, %3, %cst_23 {dimension_numbers = #tpu.dot_dimension_numbers<[1], [0], [0], [1], [0, 0, 1, 1], [], []>} : vector<2x32xf32>, vector<32x96xf32>, vector<2x96xf32> -> vector<2x96xf32>
    %25 = arith.index_cast %c0_i32_22 : i32 to index
    %c0_24 = arith.constant 0 : index
    %c0_25 = arith.constant 0 : index
    %26 = vector.load %arg9[%25, %c0_24, %c0_25] : memref<8x2x32xf32, #tpu.memory_space<vmem>>, vector<1x2x32xf32>
    %27 = vector.shape_cast %26 : vector<1x2x32xf32> to vector<2x32xf32>
    %28 = vector.extract_strided_slice %24 {offsets = [0, 0], sizes = [2, 32], strides = [1, 1]} : vector<2x96xf32> to vector<2x32xf32>
    %29 = arith.addf %27, %28 : vector<2x32xf32>
    %30 = arith.negf %29 : vector<2x32xf32>
    %31 = math.exp %30 : vector<2x32xf32>
    %cst_26 = arith.constant 1.000000e+00 : f32
    %32 = vector.broadcast %cst_26 : f32 to vector<2x32xf32>
    %33 = arith.addf %32, %31 : vector<2x32xf32>
    %34 = arith.divf %32, %33 : vector<2x32xf32>
    %35 = arith.index_cast %c0_i32_22 : i32 to index
    %c0_27 = arith.constant 0 : index
    %c0_28 = arith.constant 0 : index
    %36 = vector.load %arg10[%35, %c0_27, %c0_28] : memref<8x2x32xf32, #tpu.memory_space<vmem>>, vector<1x2x32xf32>
    %37 = vector.shape_cast %36 : vector<1x2x32xf32> to vector<2x32xf32>
    %38 = vector.extract_strided_slice %24 {offsets = [0, 32], sizes = [2, 32], strides = [1, 1]} : vector<2x96xf32> to vector<2x32xf32>
    %39 = arith.addf %37, %38 : vector<2x32xf32>
    %40 = arith.negf %39 : vector<2x32xf32>
    %41 = math.exp %40 : vector<2x32xf32>
    %cst_29 = arith.constant 1.000000e+00 : f32
    %42 = vector.broadcast %cst_29 : f32 to vector<2x32xf32>
    %43 = arith.addf %42, %41 : vector<2x32xf32>
    %44 = arith.divf %42, %43 : vector<2x32xf32>
    %45 = arith.index_cast %c0_i32_22 : i32 to index
    %c0_30 = arith.constant 0 : index
    %c0_31 = arith.constant 0 : index
    %46 = vector.load %arg11[%45, %c0_30, %c0_31] : memref<8x2x32xf32, #tpu.memory_space<vmem>>, vector<1x2x32xf32>
    %47 = vector.shape_cast %46 : vector<1x2x32xf32> to vector<2x32xf32>
    %48 = vector.extract_strided_slice %24 {offsets = [0, 64], sizes = [2, 32], strides = [1, 1]} : vector<2x96xf32> to vector<2x32xf32>
    %49 = arith.addf %48, %22 : vector<2x32xf32>
    %50 = arith.mulf %34, %49 : vector<2x32xf32>
    %51 = arith.addf %47, %50 : vector<2x32xf32>
    %52 = math.tanh %51 : vector<2x32xf32>
    %53 = arith.subf %23, %52 : vector<2x32xf32>
    %54 = arith.mulf %44, %53 : vector<2x32xf32>
    %55 = arith.addf %52, %54 : vector<2x32xf32>
    %56 = vector.shape_cast %55 : vector<2x32xf32> to vector<2x1x32xf32>
    %c0_32 = arith.constant 0 : index
    %57 = arith.index_cast %c0_i32_22 : i32 to index
    %c0_33 = arith.constant 0 : index
    %58 = vector.load %arg7[%c0_32, %57, %c0_33] : memref<2x8x32xf32, #tpu.memory_space<vmem>>, vector<2x1x32xf32>
    tpu.vector_store %arg7[%c0_32, %57, %c0_33], %56 {strides = array<i32>} : memref<2x8x32xf32, #tpu.memory_space<vmem>>, vector<2x1x32xf32>,
    %c1_i32 = arith.constant 1 : i32
    %cst_34 = arith.constant dense<0.000000e+00> : vector<2x96xf32>
    %59 = tpu.matmul %55, %3, %cst_34 {dimension_numbers = #tpu.dot_dimension_numbers<[1], [0], [0], [1], [0, 0, 1, 1], [], []>} : vector<2x32xf32>, vector<32x96xf32>, vector<2x96xf32> -> vector<2x96xf32>
    %60 = arith.index_cast %c1_i32 : i32 to index
    %c0_35 = arith.constant 0 : index
    %c0_36 = arith.constant 0 : index
    %61 = vector.load %arg9[%60, %c0_35, %c0_36] : memref<8x2x32xf32, #tpu.memory_space<vmem>>, vector<1x2x32xf32>
    %62 = vector.shape_cast %61 : vector<1x2x32xf32> to vector<2x32xf32>
    %63 = vector.extract_strided_slice %59 {offsets = [0, 0], sizes = [2, 32], strides = [1, 1]} : vector<2x96xf32> to vector<2x32xf32>
    %64 = arith.addf %62, %63 : vector<2x32xf32>
    %65 = arith.negf %64 : vector<2x32xf32>
    %66 = math.exp %65 : vector<2x32xf32>
    %cst_37 = arith.constant 1.000000e+00 : f32
    %67 = vector.broadcast %cst_37 : f32 to vector<2x32xf32>
    %68 = arith.addf %67, %66 : vector<2x32xf32>
    %69 = arith.divf %67, %68 : vector<2x32xf32>
    %70 = arith.index_cast %c1_i32 : i32 to index
    %c0_38 = arith.constant 0 : index
    %c0_39 = arith.constant 0 : index
    %71 = vector.load %arg10[%70, %c0_38, %c0_39] : memref<8x2x32xf32, #tpu.memory_space<vmem>>, vector<1x2x32xf32>
    %72 = vector.shape_cast %71 : vector<1x2x32xf32> to vector<2x32xf32>
    %73 = vector.extract_strided_slice %59 {offsets = [0, 32], sizes = [2, 32], strides = [1, 1]} : vector<2x96xf32> to vector<2x32xf32>
    %74 = arith.addf %72, %73 : vector<2x32xf32>
    %75 = arith.negf %74 : vector<2x32xf32>
    %76 = math.exp %75 : vector<2x32xf32>
    %cst_40 = arith.constant 1.000000e+00 : f32
    %77 = vector.broadcast %cst_40 : f32 to vector<2x32xf32>
    %78 = arith.addf %77, %76 : vector<2x32xf32>
    %79 = arith.divf %77, %78 : vector<2x32xf32>
    %80 = arith.index_cast %c1_i32 : i32 to index
    %c0_41 = arith.constant 0 : index
    %c0_42 = arith.constant 0 : index
    %81 = vector.load %arg11[%80, %c0_41, %c0_42] : memref<8x2x32xf32, #tpu.memory_space<vmem>>, vector<1x2x32xf32>
    %82 = vector.shape_cast %81 : vector<1x2x32xf32> to vector<2x32xf32>
    %83 = vector.extract_strided_slice %59 {offsets = [0, 64], sizes = [2, 32], strides = [1, 1]} : vector<2x96xf32> to vector<2x32xf32>
    %84 = arith.addf %83, %22 : vector<2x32xf32>
    %85 = arith.mulf %69, %84 : vector<2x32xf32>
    %86 = arith.addf %82, %85 : vector<2x32xf32>
    %87 = math.tanh %86 : vector<2x32xf32>
    %88 = arith.subf %55, %87 : vector<2x32xf32>
    %89 = arith.mulf %79, %88 : vector<2x32xf32>
    %90 = arith.addf %87, %89 : vector<2x32xf32>
    %91 = vector.shape_cast %90 : vector<2x32xf32> to vector<2x1x32xf32>
    %c0_43 = arith.constant 0 : index
    %92 = arith.index_cast %c1_i32 : i32 to index
    %c0_44 = arith.constant 0 : index
    %93 = vector.load %arg7[%c0_43, %92, %c0_44] : memref<2x8x32xf32, #tpu.memory_space<vmem>>, vector<2x1x32xf32>
    tpu.vector_store %arg7[%c0_43, %92, %c0_44], %91 {strides = array<i32>} : memref<2x8x32xf32, #tpu.memory_space<vmem>>, vector<2x1x32xf32>,
    %c2_i32 = arith.constant 2 : i32
    %cst_45 = arith.constant dense<0.000000e+00> : vector<2x96xf32>
    %94 = tpu.matmul %90, %3, %cst_45 {dimension_numbers = #tpu.dot_dimension_numbers<[1], [0], [0], [1], [0, 0, 1, 1], [], []>} : vector<2x32xf32>, vector<32x96xf32>, vector<2x96xf32> -> vector<2x96xf32>
    %95 = arith.index_cast %c2_i32 : i32 to index
    %c0_46 = arith.constant 0 : index
    %c0_47 = arith.constant 0 : index
    %96 = vector.load %arg9[%95, %c0_46, %c0_47] : memref<8x2x32xf32, #tpu.memory_space<vmem>>, vector<1x2x32xf32>
    %97 = vector.shape_cast %96 : vector<1x2x32xf32> to vector<2x32xf32>
    %98 = vector.extract_strided_slice %94 {offsets = [0, 0], sizes = [2, 32], strides = [1, 1]} : vector<2x96xf32> to vector<2x32xf32>
    %99 = arith.addf %97, %98 : vector<2x32xf32>
    %100 = arith.negf %99 : vector<2x32xf32>
    %101 = math.exp %100 : vector<2x32xf32>
    %cst_48 = arith.constant 1.000000e+00 : f32
    %102 = vector.broadcast %cst_48 : f32 to vector<2x32xf32>
    %103 = arith.addf %102, %101 : vector<2x32xf32>
    %104 = arith.divf %102, %103 : vector<2x32xf32>
    %105 = arith.index_cast %c2_i32 : i32 to index
    %c0_49 = arith.constant 0 : index
    %c0_50 = arith.constant 0 : index
    %106 = vector.load %arg10[%105, %c0_49, %c0_50] : memref<8x2x32xf32, #tpu.memory_space<vmem>>, vector<1x2x32xf32>
    %107 = vector.shape_cast %106 : vector<1x2x32xf32> to vector<2x32xf32>
    %108 = vector.extract_strided_slice %94 {offsets = [0, 32], sizes = [2, 32], strides = [1, 1]} : vector<2x96xf32> to vector<2x32xf32>
    %109 = arith.addf %107, %108 : vector<2x32xf32>
    %110 = arith.negf %109 : vector<2x32xf32>
    %111 = math.exp %110 : vector<2x32xf32>
    %cst_51 = arith.constant 1.000000e+00 : f32
    %112 = vector.broadcast %cst_51 : f32 to vector<2x32xf32>
    %113 = arith.addf %112, %111 : vector<2x32xf32>
    %114 = arith.divf %112, %113 : vector<2x32xf32>
    %115 = arith.index_cast %c2_i32 : i32 to index
    %c0_52 = arith.constant 0 : index
    %c0_53 = arith.constant 0 : index
    %116 = vector.load %arg11[%115, %c0_52, %c0_53] : memref<8x2x32xf32, #tpu.memory_space<vmem>>, vector<1x2x32xf32>
    %117 = vector.shape_cast %116 : vector<1x2x32xf32> to vector<2x32xf32>
    %118 = vector.extract_strided_slice %94 {offsets = [0, 64], sizes = [2, 32], strides = [1, 1]} : vector<2x96xf32> to vector<2x32xf32>
    %119 = arith.addf %118, %22 : vector<2x32xf32>
    %120 = arith.mulf %104, %119 : vector<2x32xf32>
    %121 = arith.addf %117, %120 : vector<2x32xf32>
    %122 = math.tanh %121 : vector<2x32xf32>
    %123 = arith.subf %90, %122 : vector<2x32xf32>
    %124 = arith.mulf %114, %123 : vector<2x32xf32>
    %125 = arith.addf %122, %124 : vector<2x32xf32>
    %126 = vector.shape_cast %125 : vector<2x32xf32> to vector<2x1x32xf32>
    %c0_54 = arith.constant 0 : index
    %127 = arith.index_cast %c2_i32 : i32 to index
    %c0_55 = arith.constant 0 : index
    %128 = vector.load %arg7[%c0_54, %127, %c0_55] : memref<2x8x32xf32, #tpu.memory_space<vmem>>, vector<2x1x32xf32>
    tpu.vector_store %arg7[%c0_54, %127, %c0_55], %126 {strides = array<i32>} : memref<2x8x32xf32, #tpu.memory_space<vmem>>, vector<2x1x32xf32>,
    %c3_i32 = arith.constant 3 : i32
    %cst_56 = arith.constant dense<0.000000e+00> : vector<2x96xf32>
    %129 = tpu.matmul %125, %3, %cst_56 {dimension_numbers = #tpu.dot_dimension_numbers<[1], [0], [0], [1], [0, 0, 1, 1], [], []>} : vector<2x32xf32>, vector<32x96xf32>, vector<2x96xf32> -> vector<2x96xf32>
    %130 = arith.index_cast %c3_i32 : i32 to index
    %c0_57 = arith.constant 0 : index
    %c0_58 = arith.constant 0 : index
    %131 = vector.load %arg9[%130, %c0_57, %c0_58] : memref<8x2x32xf32, #tpu.memory_space<vmem>>, vector<1x2x32xf32>
    %132 = vector.shape_cast %131 : vector<1x2x32xf32> to vector<2x32xf32>
    %133 = vector.extract_strided_slice %129 {offsets = [0, 0], sizes = [2, 32], strides = [1, 1]} : vector<2x96xf32> to vector<2x32xf32>
    %134 = arith.addf %132, %133 : vector<2x32xf32>
    %135 = arith.negf %134 : vector<2x32xf32>
    %136 = math.exp %135 : vector<2x32xf32>
    %cst_59 = arith.constant 1.000000e+00 : f32
    %137 = vector.broadcast %cst_59 : f32 to vector<2x32xf32>
    %138 = arith.addf %137, %136 : vector<2x32xf32>
    %139 = arith.divf %137, %138 : vector<2x32xf32>
    %140 = arith.index_cast %c3_i32 : i32 to index
    %c0_60 = arith.constant 0 : index
    %c0_61 = arith.constant 0 : index
    %141 = vector.load %arg10[%140, %c0_60, %c0_61] : memref<8x2x32xf32, #tpu.memory_space<vmem>>, vector<1x2x32xf32>
    %142 = vector.shape_cast %141 : vector<1x2x32xf32> to vector<2x32xf32>
    %143 = vector.extract_strided_slice %129 {offsets = [0, 32], sizes = [2, 32], strides = [1, 1]} : vector<2x96xf32> to vector<2x32xf32>
    %144 = arith.addf %142, %143 : vector<2x32xf32>
    %145 = arith.negf %144 : vector<2x32xf32>
    %146 = math.exp %145 : vector<2x32xf32>
    %cst_62 = arith.constant 1.000000e+00 : f32
    %147 = vector.broadcast %cst_62 : f32 to vector<2x32xf32>
    %148 = arith.addf %147, %146 : vector<2x32xf32>
    %149 = arith.divf %147, %148 : vector<2x32xf32>
    %150 = arith.index_cast %c3_i32 : i32 to index
    %c0_63 = arith.constant 0 : index
    %c0_64 = arith.constant 0 : index
    %151 = vector.load %arg11[%150, %c0_63, %c0_64] : memref<8x2x32xf32, #tpu.memory_space<vmem>>, vector<1x2x32xf32>
    %152 = vector.shape_cast %151 : vector<1x2x32xf32> to vector<2x32xf32>
    %153 = vector.extract_strided_slice %129 {offsets = [0, 64], sizes = [2, 32], strides = [1, 1]} : vector<2x96xf32> to vector<2x32xf32>
    %154 = arith.addf %153, %22 : vector<2x32xf32>
    %155 = arith.mulf %139, %154 : vector<2x32xf32>
    %156 = arith.addf %152, %155 : vector<2x32xf32>
    %157 = math.tanh %156 : vector<2x32xf32>
    %158 = arith.subf %125, %157 : vector<2x32xf32>
    %159 = arith.mulf %149, %158 : vector<2x32xf32>
    %160 = arith.addf %157, %159 : vector<2x32xf32>
    %161 = vector.shape_cast %160 : vector<2x32xf32> to vector<2x1x32xf32>
    %c0_65 = arith.constant 0 : index
    %162 = arith.index_cast %c3_i32 : i32 to index
    %c0_66 = arith.constant 0 : index
    %163 = vector.load %arg7[%c0_65, %162, %c0_66] : memref<2x8x32xf32, #tpu.memory_space<vmem>>, vector<2x1x32xf32>
    tpu.vector_store %arg7[%c0_65, %162, %c0_66], %161 {strides = array<i32>} : memref<2x8x32xf32, #tpu.memory_space<vmem>>, vector<2x1x32xf32>,
    %c4_i32 = arith.constant 4 : i32
    %cst_67 = arith.constant dense<0.000000e+00> : vector<2x96xf32>
    %164 = tpu.matmul %160, %3, %cst_67 {dimension_numbers = #tpu.dot_dimension_numbers<[1], [0], [0], [1], [0, 0, 1, 1], [], []>} : vector<2x32xf32>, vector<32x96xf32>, vector<2x96xf32> -> vector<2x96xf32>
    %165 = arith.index_cast %c4_i32 : i32 to index
    %c0_68 = arith.constant 0 : index
    %c0_69 = arith.constant 0 : index
    %166 = vector.load %arg9[%165, %c0_68, %c0_69] : memref<8x2x32xf32, #tpu.memory_space<vmem>>, vector<1x2x32xf32>
    %167 = vector.shape_cast %166 : vector<1x2x32xf32> to vector<2x32xf32>
    %168 = vector.extract_strided_slice %164 {offsets = [0, 0], sizes = [2, 32], strides = [1, 1]} : vector<2x96xf32> to vector<2x32xf32>
    %169 = arith.addf %167, %168 : vector<2x32xf32>
    %170 = arith.negf %169 : vector<2x32xf32>
    %171 = math.exp %170 : vector<2x32xf32>
    %cst_70 = arith.constant 1.000000e+00 : f32
    %172 = vector.broadcast %cst_70 : f32 to vector<2x32xf32>
    %173 = arith.addf %172, %171 : vector<2x32xf32>
    %174 = arith.divf %172, %173 : vector<2x32xf32>
    %175 = arith.index_cast %c4_i32 : i32 to index
    %c0_71 = arith.constant 0 : index
    %c0_72 = arith.constant 0 : index
    %176 = vector.load %arg10[%175, %c0_71, %c0_72] : memref<8x2x32xf32, #tpu.memory_space<vmem>>, vector<1x2x32xf32>
    %177 = vector.shape_cast %176 : vector<1x2x32xf32> to vector<2x32xf32>
    %178 = vector.extract_strided_slice %164 {offsets = [0, 32], sizes = [2, 32], strides = [1, 1]} : vector<2x96xf32> to vector<2x32xf32>
    %179 = arith.addf %177, %178 : vector<2x32xf32>
    %180 = arith.negf %179 : vector<2x32xf32>
    %181 = math.exp %180 : vector<2x32xf32>
    %cst_73 = arith.constant 1.000000e+00 : f32
    %182 = vector.broadcast %cst_73 : f32 to vector<2x32xf32>
    %183 = arith.addf %182, %181 : vector<2x32xf32>
    %184 = arith.divf %182, %183 : vector<2x32xf32>
    %185 = arith.index_cast %c4_i32 : i32 to index
    %c0_74 = arith.constant 0 : index
    %c0_75 = arith.constant 0 : index
    %186 = vector.load %arg11[%185, %c0_74, %c0_75] : memref<8x2x32xf32, #tpu.memory_space<vmem>>, vector<1x2x32xf32>
    %187 = vector.shape_cast %186 : vector<1x2x32xf32> to vector<2x32xf32>
    %188 = vector.extract_strided_slice %164 {offsets = [0, 64], sizes = [2, 32], strides = [1, 1]} : vector<2x96xf32> to vector<2x32xf32>
    %189 = arith.addf %188, %22 : vector<2x32xf32>
    %190 = arith.mulf %174, %189 : vector<2x32xf32>
    %191 = arith.addf %187, %190 : vector<2x32xf32>
    %192 = math.tanh %191 : vector<2x32xf32>
    %193 = arith.subf %160, %192 : vector<2x32xf32>
    %194 = arith.mulf %184, %193 : vector<2x32xf32>
    %195 = arith.addf %192, %194 : vector<2x32xf32>
    %196 = vector.shape_cast %195 : vector<2x32xf32> to vector<2x1x32xf32>
    %c0_76 = arith.constant 0 : index
    %197 = arith.index_cast %c4_i32 : i32 to index
    %c0_77 = arith.constant 0 : index
    %198 = vector.load %arg7[%c0_76, %197, %c0_77] : memref<2x8x32xf32, #tpu.memory_space<vmem>>, vector<2x1x32xf32>
    tpu.vector_store %arg7[%c0_76, %197, %c0_77], %196 {strides = array<i32>} : memref<2x8x32xf32, #tpu.memory_space<vmem>>, vector<2x1x32xf32>,
    %c5_i32 = arith.constant 5 : i32
    %cst_78 = arith.constant dense<0.000000e+00> : vector<2x96xf32>
    %199 = tpu.matmul %195, %3, %cst_78 {dimension_numbers = #tpu.dot_dimension_numbers<[1], [0], [0], [1], [0, 0, 1, 1], [], []>} : vector<2x32xf32>, vector<32x96xf32>, vector<2x96xf32> -> vector<2x96xf32>
    %200 = arith.index_cast %c5_i32 : i32 to index
    %c0_79 = arith.constant 0 : index
    %c0_80 = arith.constant 0 : index
    %201 = vector.load %arg9[%200, %c0_79, %c0_80] : memref<8x2x32xf32, #tpu.memory_space<vmem>>, vector<1x2x32xf32>
    %202 = vector.shape_cast %201 : vector<1x2x32xf32> to vector<2x32xf32>
    %203 = vector.extract_strided_slice %199 {offsets = [0, 0], sizes = [2, 32], strides = [1, 1]} : vector<2x96xf32> to vector<2x32xf32>
    %204 = arith.addf %202, %203 : vector<2x32xf32>
    %205 = arith.negf %204 : vector<2x32xf32>
    %206 = math.exp %205 : vector<2x32xf32>
    %cst_81 = arith.constant 1.000000e+00 : f32
    %207 = vector.broadcast %cst_81 : f32 to vector<2x32xf32>
    %208 = arith.addf %207, %206 : vector<2x32xf32>
    %209 = arith.divf %207, %208 : vector<2x32xf32>
    %210 = arith.index_cast %c5_i32 : i32 to index
    %c0_82 = arith.constant 0 : index
    %c0_83 = arith.constant 0 : index
    %211 = vector.load %arg10[%210, %c0_82, %c0_83] : memref<8x2x32xf32, #tpu.memory_space<vmem>>, vector<1x2x32xf32>
    %212 = vector.shape_cast %211 : vector<1x2x32xf32> to vector<2x32xf32>
    %213 = vector.extract_strided_slice %199 {offsets = [0, 32], sizes = [2, 32], strides = [1, 1]} : vector<2x96xf32> to vector<2x32xf32>
    %214 = arith.addf %212, %213 : vector<2x32xf32>
    %215 = arith.negf %214 : vector<2x32xf32>
    %216 = math.exp %215 : vector<2x32xf32>
    %cst_84 = arith.constant 1.000000e+00 : f32
    %217 = vector.broadcast %cst_84 : f32 to vector<2x32xf32>
    %218 = arith.addf %217, %216 : vector<2x32xf32>
    %219 = arith.divf %217, %218 : vector<2x32xf32>
    %220 = arith.index_cast %c5_i32 : i32 to index
    %c0_85 = arith.constant 0 : index
    %c0_86 = arith.constant 0 : index
    %221 = vector.load %arg11[%220, %c0_85, %c0_86] : memref<8x2x32xf32, #tpu.memory_space<vmem>>, vector<1x2x32xf32>
    %222 = vector.shape_cast %221 : vector<1x2x32xf32> to vector<2x32xf32>
    %223 = vector.extract_strided_slice %199 {offsets = [0, 64], sizes = [2, 32], strides = [1, 1]} : vector<2x96xf32> to vector<2x32xf32>
    %224 = arith.addf %223, %22 : vector<2x32xf32>
    %225 = arith.mulf %209, %224 : vector<2x32xf32>
    %226 = arith.addf %222, %225 : vector<2x32xf32>
    %227 = math.tanh %226 : vector<2x32xf32>
    %228 = arith.subf %195, %227 : vector<2x32xf32>
    %229 = arith.mulf %219, %228 : vector<2x32xf32>
    %230 = arith.addf %227, %229 : vector<2x32xf32>
    %231 = vector.shape_cast %230 : vector<2x32xf32> to vector<2x1x32xf32>
    %c0_87 = arith.constant 0 : index
    %232 = arith.index_cast %c5_i32 : i32 to index
    %c0_88 = arith.constant 0 : index
    %233 = vector.load %arg7[%c0_87, %232, %c0_88] : memref<2x8x32xf32, #tpu.memory_space<vmem>>, vector<2x1x32xf32>
    tpu.vector_store %arg7[%c0_87, %232, %c0_88], %231 {strides = array<i32>} : memref<2x8x32xf32, #tpu.memory_space<vmem>>, vector<2x1x32xf32>,
    %c6_i32 = arith.constant 6 : i32
    %cst_89 = arith.constant dense<0.000000e+00> : vector<2x96xf32>
    %234 = tpu.matmul %230, %3, %cst_89 {dimension_numbers = #tpu.dot_dimension_numbers<[1], [0], [0], [1], [0, 0, 1, 1], [], []>} : vector<2x32xf32>, vector<32x96xf32>, vector<2x96xf32> -> vector<2x96xf32>
    %235 = arith.index_cast %c6_i32 : i32 to index
    %c0_90 = arith.constant 0 : index
    %c0_91 = arith.constant 0 : index
    %236 = vector.load %arg9[%235, %c0_90, %c0_91] : memref<8x2x32xf32, #tpu.memory_space<vmem>>, vector<1x2x32xf32>
    %237 = vector.shape_cast %236 : vector<1x2x32xf32> to vector<2x32xf32>
    %238 = vector.extract_strided_slice %234 {offsets = [0, 0], sizes = [2, 32], strides = [1, 1]} : vector<2x96xf32> to vector<2x32xf32>
    %239 = arith.addf %237, %238 : vector<2x32xf32>
    %240 = arith.negf %239 : vector<2x32xf32>
    %241 = math.exp %240 : vector<2x32xf32>
    %cst_92 = arith.constant 1.000000e+00 : f32
    %242 = vector.broadcast %cst_92 : f32 to vector<2x32xf32>
    %243 = arith.addf %242, %241 : vector<2x32xf32>
    %244 = arith.divf %242, %243 : vector<2x32xf32>
    %245 = arith.index_cast %c6_i32 : i32 to index
    %c0_93 = arith.constant 0 : index
    %c0_94 = arith.constant 0 : index
    %246 = vector.load %arg10[%245, %c0_93, %c0_94] : memref<8x2x32xf32, #tpu.memory_space<vmem>>, vector<1x2x32xf32>
    %247 = vector.shape_cast %246 : vector<1x2x32xf32> to vector<2x32xf32>
    %248 = vector.extract_strided_slice %234 {offsets = [0, 32], sizes = [2, 32], strides = [1, 1]} : vector<2x96xf32> to vector<2x32xf32>
    %249 = arith.addf %247, %248 : vector<2x32xf32>
    %250 = arith.negf %249 : vector<2x32xf32>
    %251 = math.exp %250 : vector<2x32xf32>
    %cst_95 = arith.constant 1.000000e+00 : f32
    %252 = vector.broadcast %cst_95 : f32 to vector<2x32xf32>
    %253 = arith.addf %252, %251 : vector<2x32xf32>
    %254 = arith.divf %252, %253 : vector<2x32xf32>
    %255 = arith.index_cast %c6_i32 : i32 to index
    %c0_96 = arith.constant 0 : index
    %c0_97 = arith.constant 0 : index
    %256 = vector.load %arg11[%255, %c0_96, %c0_97] : memref<8x2x32xf32, #tpu.memory_space<vmem>>, vector<1x2x32xf32>
    %257 = vector.shape_cast %256 : vector<1x2x32xf32> to vector<2x32xf32>
    %258 = vector.extract_strided_slice %234 {offsets = [0, 64], sizes = [2, 32], strides = [1, 1]} : vector<2x96xf32> to vector<2x32xf32>
    %259 = arith.addf %258, %22 : vector<2x32xf32>
    %260 = arith.mulf %244, %259 : vector<2x32xf32>
    %261 = arith.addf %257, %260 : vector<2x32xf32>
    %262 = math.tanh %261 : vector<2x32xf32>
    %263 = arith.subf %230, %262 : vector<2x32xf32>
    %264 = arith.mulf %254, %263 : vector<2x32xf32>
    %265 = arith.addf %262, %264 : vector<2x32xf32>
    %266 = vector.shape_cast %265 : vector<2x32xf32> to vector<2x1x32xf32>
    %c0_98 = arith.constant 0 : index
    %267 = arith.index_cast %c6_i32 : i32 to index
    %c0_99 = arith.constant 0 : index
    %268 = vector.load %arg7[%c0_98, %267, %c0_99] : memref<2x8x32xf32, #tpu.memory_space<vmem>>, vector<2x1x32xf32>
    tpu.vector_store %arg7[%c0_98, %267, %c0_99], %266 {strides = array<i32>} : memref<2x8x32xf32, #tpu.memory_space<vmem>>, vector<2x1x32xf32>,
    %c7_i32 = arith.constant 7 : i32
    %cst_100 = arith.constant dense<0.000000e+00> : vector<2x96xf32>
    %269 = tpu.matmul %265, %3, %cst_100 {dimension_numbers = #tpu.dot_dimension_numbers<[1], [0], [0], [1], [0, 0, 1, 1], [], []>} : vector<2x32xf32>, vector<32x96xf32>, vector<2x96xf32> -> vector<2x96xf32>
    %270 = arith.index_cast %c7_i32 : i32 to index
    %c0_101 = arith.constant 0 : index
    %c0_102 = arith.constant 0 : index
    %271 = vector.load %arg9[%270, %c0_101, %c0_102] : memref<8x2x32xf32, #tpu.memory_space<vmem>>, vector<1x2x32xf32>
    %272 = vector.shape_cast %271 : vector<1x2x32xf32> to vector<2x32xf32>
    %273 = vector.extract_strided_slice %269 {offsets = [0, 0], sizes = [2, 32], strides = [1, 1]} : vector<2x96xf32> to vector<2x32xf32>
    %274 = arith.addf %272, %273 : vector<2x32xf32>
    %275 = arith.negf %274 : vector<2x32xf32>
    %276 = math.exp %275 : vector<2x32xf32>
    %cst_103 = arith.constant 1.000000e+00 : f32
    %277 = vector.broadcast %cst_103 : f32 to vector<2x32xf32>
    %278 = arith.addf %277, %276 : vector<2x32xf32>
    %279 = arith.divf %277, %278 : vector<2x32xf32>
    %280 = arith.index_cast %c7_i32 : i32 to index
    %c0_104 = arith.constant 0 : index
    %c0_105 = arith.constant 0 : index
    %281 = vector.load %arg10[%280, %c0_104, %c0_105] : memref<8x2x32xf32, #tpu.memory_space<vmem>>, vector<1x2x32xf32>
    %282 = vector.shape_cast %281 : vector<1x2x32xf32> to vector<2x32xf32>
    %283 = vector.extract_strided_slice %269 {offsets = [0, 32], sizes = [2, 32], strides = [1, 1]} : vector<2x96xf32> to vector<2x32xf32>
    %284 = arith.addf %282, %283 : vector<2x32xf32>
    %285 = arith.negf %284 : vector<2x32xf32>
    %286 = math.exp %285 : vector<2x32xf32>
    %cst_106 = arith.constant 1.000000e+00 : f32
    %287 = vector.broadcast %cst_106 : f32 to vector<2x32xf32>
    %288 = arith.addf %287, %286 : vector<2x32xf32>
    %289 = arith.divf %287, %288 : vector<2x32xf32>
    %290 = arith.index_cast %c7_i32 : i32 to index
    %c0_107 = arith.constant 0 : index
    %c0_108 = arith.constant 0 : index
    %291 = vector.load %arg11[%290, %c0_107, %c0_108] : memref<8x2x32xf32, #tpu.memory_space<vmem>>, vector<1x2x32xf32>
    %292 = vector.shape_cast %291 : vector<1x2x32xf32> to vector<2x32xf32>
    %293 = vector.extract_strided_slice %269 {offsets = [0, 64], sizes = [2, 32], strides = [1, 1]} : vector<2x96xf32> to vector<2x32xf32>
    %294 = arith.addf %293, %22 : vector<2x32xf32>
    %295 = arith.mulf %279, %294 : vector<2x32xf32>
    %296 = arith.addf %292, %295 : vector<2x32xf32>
    %297 = math.tanh %296 : vector<2x32xf32>
    %298 = arith.subf %265, %297 : vector<2x32xf32>
    %299 = arith.mulf %289, %298 : vector<2x32xf32>
    %300 = arith.addf %297, %299 : vector<2x32xf32>
    %301 = vector.shape_cast %300 : vector<2x32xf32> to vector<2x1x32xf32>
    %c0_109 = arith.constant 0 : index
    %302 = arith.index_cast %c7_i32 : i32 to index
    %c0_110 = arith.constant 0 : index
    %303 = vector.load %arg7[%c0_109, %302, %c0_110] : memref<2x8x32xf32, #tpu.memory_space<vmem>>, vector<2x1x32xf32>
    tpu.vector_store %arg7[%c0_109, %302, %c0_110], %301 {strides = array<i32>} : memref<2x8x32xf32, #tpu.memory_space<vmem>>, vector<2x1x32xf32>,
    %c8_i32 = arith.constant 8 : i32
    %c0_111 = arith.constant 0 : index
    %c0_112 = arith.constant 0 : index
    %304 = vector.load %arg8[%c0_111, %c0_112] : memref<2x32xf32, #tpu.memory_space<vmem>>, vector<2x32xf32>
    tpu.vector_store %arg8[%c0_111, %c0_112], %300 {strides = array<i32>} : memref<2x32xf32, #tpu.memory_space<vmem>>, vector<2x32xf32>,
    return
  }
  func.func @transform_0(%arg0: i32) -> (i32, i32, i32) {
    %c0_i32 = arith.constant 0 : i32
    %c0_i32_0 = arith.constant 0 : i32
    %c0_i32_1 = arith.constant 0 : i32
    return %arg0, %c0_i32, %c0_i32_0 : i32, i32, i32
  }
  func.func @transform_1(%arg0: i32) -> (i32, i32) {
    %c0_i32 = arith.constant 0 : i32
    %c0_i32_0 = arith.constant 0 : i32
    %c0_i32_1 = arith.constant 0 : i32
    return %c0_i32, %c0_i32_0 : i32, i32
  }
  func.func @transform_2(%arg0: i32) -> (i32, i32) {
    %c0_i32 = arith.constant 0 : i32
    %c0_i32_0 = arith.constant 0 : i32
    %c0_i32_1 = arith.constant 0 : i32
    return %c0_i32, %c0_i32_0 : i32, i32
  }
  func.func @transform_3(%arg0: i32) -> (i32, i32) {
    %c0_i32 = arith.constant 0 : i32
    %c0_i32_0 = arith.constant 0 : i32
    %c0_i32_1 = arith.constant 0 : i32
    return %c0_i32, %c0_i32_0 : i32, i32
  }
  func.func @transform_4(%arg0: i32) -> (i32, i32) {
    %c0_i32 = arith.constant 0 : i32
    %c0_i32_0 = arith.constant 0 : i32
    %c0_i32_1 = arith.constant 0 : i32
    return %c0_i32, %c0_i32_0 : i32, i32
  }
  func.func @transform_5(%arg0: i32) -> (i32, i32) {
    %c0_i32 = arith.constant 0 : i32
    %c0_i32_0 = arith.constant 0 : i32
    %c0_i32_1 = arith.constant 0 : i32
    return %c0_i32, %c0_i32_0 : i32, i32
  }
  func.func @transform_6(%arg0: i32) -> (i32, i32, i32) {
    %c0_i32 = arith.constant 0 : i32
    %c0_i32_0 = arith.constant 0 : i32
    %c0_i32_1 = arith.constant 0 : i32
    return %c0_i32, %arg0, %c0_i32_0 : i32, i32, i32
  }
  func.func @transform_7(%arg0: i32) -> (i32, i32) {
    %c0_i32 = arith.constant 0 : i32
    %c0_i32_0 = arith.constant 0 : i32
    %c0_i32_1 = arith.constant 0 : i32
    return %c0_i32, %c0_i32_0 : i32, i32
  }
}

</mosaic_0001>

<bundles_post_ra>
// kernel: decoder_rnn_forward.3
= control target key start
LH: loop header
LB: loop body
LE: loop exit
PB: predicated region body
PF: predicated region fallthrough
CT: control target
= control target key end

     0   :  { %s2253_s0 = inlined_call_operand.vmem [shape: f32[2,8,32], index: 0, kind: input, shape index: {}]   ;;  %s2254_s1 = inlined_call_operand.vmem [shape: bf16[32,1000], index: 1, kind: input, shape index: {}]   ;;  %s2255_s2 = inlined_call_operand.vmem [shape: f32[1,1000], index: 2, kind: input, shape index: {}]   ;;  %s2256_s3 = inlined_call_operand.hbm [shape: f32[2,8,1000], index: 3, kind: output, shape index: {}]  }
   0x1   :  { %2257 = sst [smem:[#allocation6_spill]] %s2254_s1 }
   0x2   :  { %8 = vsyncpa [#allocation4], 0 }
   0x3   :  { %10 = vsyncpa [#allocation4 + $0x1], 0  ;;  %s1637_s12 = smov 0   ;;  %s1639_s13 = smov 0  }
   0x4   :  { %s1641_s14 = smov 0   ;;  %s1643_s15 = smov 0  }
   0x5 LB: > { %s1658_s16 = sadd.s32 4294967295, %s1543_s15   ;;  %s1148_s17 = sadd.s32 4294967294, %s1543_s15   ;;  %s1543_s15 = sphi %s1643_s15, %s2282_s15   ;;  %s1539_s14 = sphi %s1641_s14, %s2281_s14   ;;  %s1535_s13 = sphi %s1639_s13, %s2280_s13   ;;  %s1531_s12 = sphi %s1637_s12, %s2279_s12  }
   0x6   : > { %s1662_s18 = sadd.s32 1, %s1543_s15   ;;  %s44_s19 = sadd.s32 1, %s1539_s14 }
   0x7   : > { %s41_s20 = ssub.s32 %s1543_s15, %s1662_s18  ;;  %p51_p0 = scmp.ne.s32.totalorder %s1539_s14, %s1535_s13 }
   0x8   : > { %p42_p1 = scmp.eq.s32.totalorder %s41_s20, 0  ;;  %p52_p2 = scmp.eq.s32.totalorder %s1543_s15, 0 }
   0x9   : > { %p107_p3 = scmp.eq.s32.totalorder %s1658_s16, 1  ;;  %p112_p4 = scmp.ne.s32.totalorder %s1535_s13, %s1531_s12 }
   0xa   : > { %s1674_s21 = scalar_select %p42_p1, %s1539_s14, %s44_s19  }
   0xb   : > { %p53_p5 = por %p52_p2, %p51_p0  ;;  %p1676_p6 = por %p107_p3, %p51_p0 }
   0xc   : > { %p113_p7 = scmp.eq.s32.totalorder %s1148_s17, 1  ;;  %p1150_p9 = scmp.ge.s32.totalorder %s1543_s15, 2 }
   0xe   : > { %p1680_p8 = por %p113_p7, %p112_p4  ;;  %132 = sbr.rel (%p1150_p9) target bundleno = 196 (0xc4), region = 20 }
  0x15   : > { %135 = sbr.rel (!%p53_p5) target bundleno = 196 (0xc4), region = 24  ;;  %s137_s24 = sand.u32 (%p53_p5), 1, %s1539_s14  }
  0x16   : > { %s140_s25 = smul.u32 (%p53_p5), 7, %s1543_s15  ;;  %s2260_s1 = sld [smem:[#allocation6_spill]] (%p53_p5) }
  0x17   : > { %s1222_s26 = smul.u32 (%p53_p5), 112, %s137_s24 }
  0x18   : > { %s141_s27 = ssub.s32 (%p53_p5), 8, %s140_s25  ;;  %s1203_s28 = smul.u32 (%p53_p5), 28, %s1543_s15 }
  0x19   : > { %p142_p10 = scmp.lt.s32.totalorder (%p53_p5), %s141_s27, 7  ;;  %s1697_s7 = scalar_lea.vmem (%p53_p5), [#allocation2], %s1222_s26  }
  0x1c   : > { %s1693_s4 = scalar_lea.vmem %s2260_s1, %s1203_s28   ;;  %s2284_s27 = smov (!%p142_p10, %s141_s27), 7 }
  0x1d   : > { %s1151_s5 = sshll.u32 %s2284_s27, 8  ;;  %s1695_s6 = sshll.u32 %s2284_s27, 2 }
  0x1e   : > { %p1155_p11 = scmp.eq.s32.totalorder %s1151_s5, 0 }
  0x1f   : > { %p152_p12 = scmp.lt.u32.totalorder (!%p1155_p11), %s1695_s6, 8 }
  0x20   : > { %151 = sbr.rel (%p1155_p11) target bundleno = 196 (0xc4), region = 28 }
  0x27   : > { %155 = sbr.rel (%p152_p12) target bundleno = 187 (0xbb), region = 32  ;;  %s1701_s8 = sand.u32 (!%p152_p12), 7, %s1695_s6  }
  0x28   : > { %p177_p13 = scmp.eq.s32.totalorder (!%p152_p12), %s1701_s8, 0  ;;  %p1156_p0 = scmp.ne.s32.totalorder (!%p152_p12), %s1701_s8, 0 }
  0x2e   : > { %180 = sbr.rel (%p1156_p0) target bundleno = 113 (0x71), region = 47  ;;  %s181_s9 = sshrl.u32 (!%p1156_p0), %s1695_s6, 3 }
  0x2f   : > { %s1708_s10 = sshrl.u32 (!%p1156_p0), %s181_s9, 4 }
  0x30   : > { %p1157_p1 = scmp.le.s32.totalorder (!%p1156_p0), %s1708_s10, 0 }
  0x35   : > { %1070 = sbr.rel (%p1157_p1) target bundleno = 93 (0x5d), region = 153  ;;  %s2261_s11 = smov (!%p1157_p1), %s1697_s7 }
  0x36   : > { %s2262_s17 = smov (!%p1157_p1), %s1693_s4  ;;  %s1717_s19 = smov (!%p1157_p1), 0  }
  0x37   : > { %s1719_s20 = smov (!%p1157_p1), 0  }
  0x3c LB: >> { %v1734_v0 = vld [vmem:[%s1551_s17 + $0x48] sm:$0xff]  ;;  %v1737_v1 = vld [vmem:[%s1551_s17 + $0x50] sm:$0xff]  ;;  %v216_v2 = vld [vmem:[%s1551_s17 + $0x58] sm:$0xff]  ;;  %s322_s24 = sadd.s32 1, %s1555_s19  ;;  %s188_s20 = sadd.s32 1, %s1559_s20   ;;  %s1559_s20 = sphi %s1719_s20, %s188_s20   ;;  %s1555_s19 = sphi %s1717_s19, %s2266_s19   ;;  %s1551_s17 = sphi %s2262_s17, %s2265_s17   ;;  %s1547_s11 = sphi %s2261_s11, %s2264_s11  }
  0x3d   : >> { %213 = vst [vmem:[%s1547_s11 + $0x48] sm:$0xff] %v1734_v0  ;;  %215 = vst [vmem:[%s1547_s11 + $0x50] sm:$0xff] %v1737_v1  ;;  %v218_v3 = vld [vmem:[%s1551_s17 + $0x60] sm:$0xff]  ;;  %v220_v4 = vld [vmem:[%s1551_s17 + $0x68] sm:$0xff]  ;;  %p1774_p2 = scmp.ge.s32.totalorder %s322_s24, %s1708_s10  ;;  %p187_p3 = scmp.ge.s32.totalorder %s188_s20, %s1708_s10 }
  0x3e   : >> { %217 = vst [vmem:[%s1547_s11 + $0x58] sm:$0xff] %v216_v2  ;;  %v222_v5 = vld [vmem:[%s1551_s17 + $0x70] sm:$0xff]  ;;  %219 = vst [vmem:[%s1547_s11 + $0x60] sm:$0xff] %v218_v3  ;;  %v224_v6 = vld [vmem:[%s1551_s17 + $0x78] sm:$0xff] }
  0x3f   : >> { %221 = vst [vmem:[%s1547_s11 + $0x68] sm:$0xff] %v220_v4  ;;  %223 = vst [vmem:[%s1547_s11 + $0x70] sm:$0xff] %v222_v5  ;;  %v1753_v7 = vld [vmem:[%s1551_s17 + $0x30] sm:$0xff]  ;;  %v208_v8 = vld [vmem:[%s1551_s17 + $0x38] sm:$0xff]  ;;  %s2286_s24 = smov (%p1774_p2, %s322_s24), 0 }
  0x40   : >> { %239 = vst [vmem:[%s1547_s11 + $0x4c] sm:$0xff] %v1737_v1  ;;  %241 = vst [vmem:[%s1547_s11 + $0x54] sm:$0xff] %v216_v2  ;;  %v210_v9 = vld [vmem:[%s1551_s17 + $0x40] sm:$0xff]  ;;  %v252_v11 = vld [vmem:[%s1551_s17 + $0x88] sm:$0xff]  ;;  %s1158_s26 = sshll.u32 %s2286_s24, 7  ;;  %s2266_s19 = smov %s2286_s24 }
  0x41   : >> { %225 = vst [vmem:[%s1547_s11 + $0x78] sm:$0xff] %v224_v6  ;;  %207 = vst [vmem:[%s1547_s11 + $0x30] sm:$0xff] %v1753_v7  ;;  %v250_v10 = vld [vmem:[%s1551_s17 + $0x80] sm:$0xff]  ;;  %v254_v12 = vld [vmem:[%s1551_s17 + $0x90] sm:$0xff]  ;;  %s327_s27 = scalar_lea.vmem %s1693_s4, %s1158_s26   ;;  %s328_s28 = scalar_lea.vmem %s1697_s7, %s1158_s26 [#allocation2]  }
  0x42   : >> { %209 = vst [vmem:[%s1547_s11 + $0x38] sm:$0xff] %v208_v8  ;;  %243 = vst [vmem:[%s1547_s11 + $0x5c] sm:$0xff] %v218_v3  ;;  %v256_v13 = vld [vmem:[%s1551_s17 + $0x98] sm:$0xff]  ;;  %v202_v15 = vld [vmem:[%s1551_s17 + $0x20] sm:$0xff] }
  0x43   : >> { %245 = vst [vmem:[%s1547_s11 + $0x64] sm:$0xff] %v220_v4  ;;  %247 = vst [vmem:[%s1547_s11 + $0x6c] sm:$0xff] %v222_v5  ;;  %v200_v14 = vld [vmem:[%s1551_s17 + $0x18] sm:$0xff]  ;;  %v204_v16 = vld [vmem:[%s1551_s17 + $0x28] sm:$0xff] }
  0x44   : >> { %265 = vst [vmem:[%s1547_s11 + $0x50] sm:$0xff] %v216_v2  ;;  %211 = vst [vmem:[%s1547_s11 + $0x40] sm:$0xff] %v210_v9  ;;  %v282_v17 = vld [vmem:[%s1551_s17 + $0xa0] sm:$0xff]  ;;  %v284_v18 = vld [vmem:[%s1551_s17 + $0xa8] sm:$0xff] }
  0x45   : >> { %249 = vst [vmem:[%s1547_s11 + $0x74] sm:$0xff] %v224_v6  ;;  %251 = vst [vmem:[%s1547_s11 + $0x7c] sm:$0xff] %v250_v10  ;;  %v286_v19 = vld [vmem:[%s1551_s17 + $0xb0] sm:$0xff]  ;;  %v288_v20 = vld [vmem:[%s1551_s17 + $0xb8] sm:$0xff] }
  0x46   : >> { %253 = vst [vmem:[%s1547_s11 + $0x84] sm:$0xff] %v252_v11  ;;  %233 = vst [vmem:[%s1547_s11 + $0x34] sm:$0xff] %v208_v8  ;;  %v194_v21 = vld [vmem:[%s1551_s17] sm:$0xff]  ;;  %v196_v22 = vld [vmem:[%s1551_s17 + $0x8] sm:$0xff] }
  0x47   : >> { %267 = vst [vmem:[%s1547_s11 + $0x58] sm:$0xff] %v218_v3  ;;  %269 = vst [vmem:[%s1547_s11 + $0x60] sm:$0xff] %v220_v4  ;;  %v198_v23 = vld [vmem:[%s1551_s17 + $0x10] sm:$0xff]  ;;  %v314_v24 = vld [vmem:[%s1551_s17 + $0xc0] sm:$0xff] }
  0x48   : >> { %271 = vst [vmem:[%s1547_s11 + $0x68] sm:$0xff] %v222_v5  ;;  %255 = vst [vmem:[%s1547_s11 + $0x8c] sm:$0xff] %v254_v12  ;;  %v316_v25 = vld [vmem:[%s1551_s17 + $0xc8] sm:$0xff]  ;;  %v318_v26 = vld [vmem:[%s1551_s17 + $0xd0] sm:$0xff] }
  0x49   : >> { %257 = vst [vmem:[%s1547_s11 + $0x94] sm:$0xff] %v256_v13  ;;  %201 = vst [vmem:[%s1547_s11 + $0x18] sm:$0xff] %v200_v14  ;;  %v320_v27 = vld [vmem:[%s1551_s17 + $0xd8] sm:$0xff]  ;;  %s2265_s17 = smov %s327_s27 }
  0x4a   : >> { %235 = vst [vmem:[%s1547_s11 + $0x3c] sm:$0xff] %v210_v9  ;;  %237 = vst [vmem:[%s1547_s11 + $0x44] sm:$0xff] %v1734_v0 }
  0x4b   : >> { %273 = vst [vmem:[%s1547_s11 + $0x70] sm:$0xff] %v224_v6  ;;  %275 = vst [vmem:[%s1547_s11 + $0x78] sm:$0xff] %v250_v10 }
  0x4c   : >> { %277 = vst [vmem:[%s1547_s11 + $0x80] sm:$0xff] %v252_v11  ;;  %291 = vst [vmem:[%s1547_s11 + $0x54] sm:$0xff] %v218_v3 }
  0x4d   : >> { %293 = vst [vmem:[%s1547_s11 + $0x5c] sm:$0xff] %v220_v4  ;;  %295 = vst [vmem:[%s1547_s11 + $0x64] sm:$0xff] %v222_v5 }
  0x4e   : >> { %203 = vst [vmem:[%s1547_s11 + $0x20] sm:$0xff] %v202_v15  ;;  %205 = vst [vmem:[%s1547_s11 + $0x28] sm:$0xff] %v204_v16 }
  0x4f   : >> { %279 = vst [vmem:[%s1547_s11 + $0x88] sm:$0xff] %v254_v12  ;;  %281 = vst [vmem:[%s1547_s11 + $0x90] sm:$0xff] %v256_v13 }
  0x50   : >> { %283 = vst [vmem:[%s1547_s11 + $0x98] sm:$0xff] %v282_v17  ;;  %259 = vst [vmem:[%s1547_s11 + $0x38] sm:$0xff] %v210_v9 }
  0x51   : >> { %261 = vst [vmem:[%s1547_s11 + $0x40] sm:$0xff] %v1734_v0  ;;  %263 = vst [vmem:[%s1547_s11 + $0x48] sm:$0xff] %v1737_v1 }
  0x52   : >> { %297 = vst [vmem:[%s1547_s11 + $0x6c] sm:$0xff] %v224_v6  ;;  %299 = vst [vmem:[%s1547_s11 + $0x74] sm:$0xff] %v250_v10 }
  0x53   : >> { %301 = vst [vmem:[%s1547_s11 + $0x7c] sm:$0xff] %v252_v11  ;;  %285 = vst [vmem:[%s1547_s11 + $0xa0] sm:$0xff] %v284_v18 }
  0x54   : >> { %287 = vst [vmem:[%s1547_s11 + $0xa8] sm:$0xff] %v286_v19  ;;  %289 = vst [vmem:[%s1547_s11 + $0xb0] sm:$0xff] %v288_v20 }
  0x55   : >> { %227 = vst [vmem:[%s1547_s11 + $0x1c] sm:$0xff] %v202_v15  ;;  %229 = vst [vmem:[%s1547_s11 + $0x24] sm:$0xff] %v204_v16 }
  0x56   : >> { %231 = vst [vmem:[%s1547_s11 + $0x2c] sm:$0xff] %v1753_v7  ;;  %303 = vst [vmem:[%s1547_s11 + $0x84] sm:$0xff] %v254_v12  ;;  %190 = sbr.rel (!%p187_p3) target bundleno = 60 (0x3c), region = 159 }
  0x57   : >> { %305 = vst [vmem:[%s1547_s11 + $0x8c] sm:$0xff] %v256_v13  ;;  %307 = vst [vmem:[%s1547_s11 + $0x94] sm:$0xff] %v282_v17 }
  0x58   : >> { %195 = vst [vmem:[%s1547_s11] sm:$0xff] %v194_v21  ;;  %197 = vst [vmem:[%s1547_s11 + $0x8] sm:$0xff] %v196_v22 }
  0x59   : >> { %199 = vst [vmem:[%s1547_s11 + $0x10] sm:$0xff] %v198_v23  ;;  %309 = vst [vmem:[%s1547_s11 + $0x9c] sm:$0xff] %v284_v18 }
  0x5a   : >> { %311 = vst [vmem:[%s1547_s11 + $0xa4] sm:$0xff] %v286_v19  ;;  %313 = vst [vmem:[%s1547_s11 + $0xac] sm:$0xff] %v288_v20 }
  0x5b   : >> { %315 = vst [vmem:[%s1547_s11 + $0xb4] sm:$0xff] %v314_v24  ;;  %317 = vst [vmem:[%s1547_s11 + $0xbc] sm:$0xff] %v316_v25 }
  0x5c   : >> { %319 = vst [vmem:[%s1547_s11 + $0xc4] sm:$0xff] %v318_v26  ;;  %321 = vst [vmem:[%s1547_s11 + $0xcc] sm:$0xff] %v320_v27  ;;  %s2264_s11 = smov %s328_s28 }
  0x5d PF: > { %s1869_s29 = sand.u32 15, %s181_s9   ;;  %s1204_s30 = sshll.u32 %s1708_s10, 11 }
  0x5e   : > { %s333_s5 = sshra.s32 %s1204_s30, 4  ;;  %p1163_p4 = scmp.le.s32.totalorder %s1869_s29, 0 }
  0x5f   : > { %s1873_s25 = scalar_lea.vmem %s1693_s4, %s333_s5   ;;  %s1876_s26 = scalar_lea.vmem %s1697_s7, %s333_s5 [#allocation2]  }
  0x60   : > { %1084 = sbr.rel (%p1163_p4) target bundleno = 113 (0x71), region = 164  ;;  %s2267_s11 = smov (!%p1163_p4), %s1876_s26 }
  0x61   : > { %s2268_s17 = smov (!%p1163_p4), %s1873_s25  ;;  %s1885_s19 = smov (!%p1163_p4), 0  }
  0x62   : > { %s1573_s20 = smov (!%p1163_p4), 0  }
  0x67 LB: >> { %v349_v28 = vld [vmem:[%s1567_s17] sm:$0xff]  ;;  %s357_s9 = sadd.s32 1, %s1571_s19  ;;  %s343_s20 = sadd.s32 1, %s1575_s20   ;;  %s1575_s20 = sphi %s1573_s20, %s343_s20   ;;  %s1571_s19 = sphi %s1885_s19, %s2269_s19   ;;  %s1567_s17 = sphi %s2268_s17, %s362_s17   ;;  %s1563_s11 = sphi %s2267_s11, %s363_s11  }
  0x68   : >> { %v351_v29 = vld [vmem:[%s1567_s17 + $0x20] sm:$0xff]  ;;  %350 = vst [vmem:[%s1563_s11] sm:$0xff] %v349_v28  ;;  %p358_p5 = scmp.ge.s32.totalorder %s357_s9, %s1869_s29  ;;  %p342_p7 = scmp.ge.s32.totalorder %s343_s20, %s1869_s29 }
  0x69   : >> { %v353_v30 = vld [vmem:[%s1567_s17 + $0x40] sm:$0xff]  ;;  %352 = vst [vmem:[%s1563_s11 + $0x1c] sm:$0xff] %v351_v29 }
  0x6a   : >> { %354 = vst [vmem:[%s1563_s11 + $0x38] sm:$0xff] %v353_v30  ;;  %v355_v31 = vld [vmem:[%s1567_s17 + $0x60] sm:$0xff]  ;;  %s2288_s9 = smov (%p358_p5, %s357_s9), 0  ;;  %345 = sbr.rel (!%p342_p7) target bundleno = 103 (0x67), region = 170 }
  0x6b   : >> { %356 = vst [vmem:[%s1563_s11 + $0x54] sm:$0xff] %v355_v31  ;;  %s1164_s10 = sshll.u32 %s2288_s9, 3  ;;  %s2269_s19 = smov %s2288_s9 }
  0x6c   : >> { %s362_s17 = scalar_lea.vmem %s1873_s25, %s1164_s10   ;;  %s363_s11 = scalar_lea.vmem %s1876_s26, %s1164_s10 [#allocation2]  }
  0x71 PF: > { %366 = sbr.rel (%p177_p13) target bundleno = 187 (0xbb), region = 65  ;;  %s368_s24 = ssub.s32 (!%p177_p13), %s1695_s6, %s1701_s8 }
  0x72   : > { %s372_s27 = sshrl.u32 (!%p177_p13), %s1695_s6, 3  ;;  %s1906_s28 = scalar_lea.vmem (!%p177_p13), %s1693_s4, %s368_s24 }
  0x73   : > { %s1909_s30 = scalar_lea.vmem (!%p177_p13), %s1697_s7, %s368_s24 [#allocation2]  ;;  %s1913_s5 = sshrl.u32 (!%p177_p13), %s372_s27, 4 }
  0x74   : > { %p1166_p10 = scmp.le.s32.totalorder (!%p177_p13), %s1913_s5, 0 }
  0x78   : > { %1098 = sbr.rel (%p1166_p10) target bundleno = 160 (0xa0), region = 175  ;;  %s2270_s29 = smov (!%p1166_p10), %s1697_s7 }
  0x79   : > { %s2271_s25 = smov (!%p1166_p10), %s1693_s4  ;;  %s1922_s26 = smov (!%p1166_p10), 0  }
  0x7a   : > { %s1924_s11 = smov (!%p1166_p10), 0  }
  0x7f LB: >> { %v1939_v32 = vld [vmem:[%s1583_s25 + $0x48] sm:$0xff]  ;;  %v1942_v33 = vld [vmem:[%s1583_s25 + $0x50] sm:$0xff]  ;;  %v407_v34 = vld [vmem:[%s1583_s25 + $0x58] sm:$0xff]  ;;  %s513_s17 = sadd.s32 1, %s1587_s26  ;;  %s379_s11 = sadd.s32 1, %s1591_s11   ;;  %s1591_s11 = sphi %s1924_s11, %s379_s11   ;;  %s1587_s26 = sphi %s1922_s26, %s2275_s26   ;;  %s1583_s25 = sphi %s2271_s25, %s2274_s25   ;;  %s1579_s29 = sphi %s2270_s29, %s2273_s29  }
  0x80   : >> { %404 = vst [vmem:[%s1579_s29 + $0x48] sm:$0xff] %v1939_v32  ;;  %406 = vst [vmem:[%s1579_s29 + $0x50] sm:$0xff] %v1942_v33  ;;  %v409_v35 = vld [vmem:[%s1583_s25 + $0x60] sm:$0xff]  ;;  %v411_v36 = vld [vmem:[%s1583_s25 + $0x68] sm:$0xff]  ;;  %p1979_p11 = scmp.ge.s32.totalorder %s513_s17, %s1913_s5  ;;  %p378_p12 = scmp.ge.s32.totalorder %s379_s11, %s1913_s5 }
  0x81   : >> { %408 = vst [vmem:[%s1579_s29 + $0x58] sm:$0xff] %v407_v34  ;;  %v413_v37 = vld [vmem:[%s1583_s25 + $0x70] sm:$0xff]  ;;  %410 = vst [vmem:[%s1579_s29 + $0x60] sm:$0xff] %v409_v35  ;;  %v415_v38 = vld [vmem:[%s1583_s25 + $0x78] sm:$0xff] }
  0x82   : >> { %412 = vst [vmem:[%s1579_s29 + $0x68] sm:$0xff] %v411_v36  ;;  %414 = vst [vmem:[%s1579_s29 + $0x70] sm:$0xff] %v413_v37  ;;  %v1958_v39 = vld [vmem:[%s1583_s25 + $0x30] sm:$0xff]  ;;  %v399_v40 = vld [vmem:[%s1583_s25 + $0x38] sm:$0xff]  ;;  %s2290_s17 = smov (%p1979_p11, %s513_s17), 0 }
  0x83   : >> { %430 = vst [vmem:[%s1579_s29 + $0x4c] sm:$0xff] %v1942_v33  ;;  %432 = vst [vmem:[%s1579_s29 + $0x54] sm:$0xff] %v407_v34  ;;  %v401_v41 = vld [vmem:[%s1583_s25 + $0x40] sm:$0xff]  ;;  %v443_v43 = vld [vmem:[%s1583_s25 + $0x88] sm:$0xff]  ;;  %s1167_s20 = sshll.u32 %s2290_s17, 7  ;;  %s2275_s26 = smov %s2290_s17 }
  0x84   : >> { %416 = vst [vmem:[%s1579_s29 + $0x78] sm:$0xff] %v415_v38  ;;  %398 = vst [vmem:[%s1579_s29 + $0x30] sm:$0xff] %v1958_v39  ;;  %v441_v42 = vld [vmem:[%s1583_s25 + $0x80] sm:$0xff]  ;;  %v445_v44 = vld [vmem:[%s1583_s25 + $0x90] sm:$0xff]  ;;  %s518_s9 = scalar_lea.vmem %s1693_s4, %s1167_s20   ;;  %s519_s10 = scalar_lea.vmem %s1697_s7, %s1167_s20 [#allocation2]  }
  0x85   : >> { %400 = vst [vmem:[%s1579_s29 + $0x38] sm:$0xff] %v399_v40  ;;  %434 = vst [vmem:[%s1579_s29 + $0x5c] sm:$0xff] %v409_v35  ;;  %v447_v45 = vld [vmem:[%s1583_s25 + $0x98] sm:$0xff]  ;;  %v393_v47 = vld [vmem:[%s1583_s25 + $0x20] sm:$0xff] }
  0x86   : >> { %436 = vst [vmem:[%s1579_s29 + $0x64] sm:$0xff] %v411_v36  ;;  %438 = vst [vmem:[%s1579_s29 + $0x6c] sm:$0xff] %v413_v37  ;;  %v391_v46 = vld [vmem:[%s1583_s25 + $0x18] sm:$0xff]  ;;  %v395_v48 = vld [vmem:[%s1583_s25 + $0x28] sm:$0xff] }
  0x87   : >> { %456 = vst [vmem:[%s1579_s29 + $0x50] sm:$0xff] %v407_v34  ;;  %402 = vst [vmem:[%s1579_s29 + $0x40] sm:$0xff] %v401_v41  ;;  %v473_v49 = vld [vmem:[%s1583_s25 + $0xa0] sm:$0xff]  ;;  %v475_v50 = vld [vmem:[%s1583_s25 + $0xa8] sm:$0xff] }
  0x88   : >> { %440 = vst [vmem:[%s1579_s29 + $0x74] sm:$0xff] %v415_v38  ;;  %442 = vst [vmem:[%s1579_s29 + $0x7c] sm:$0xff] %v441_v42  ;;  %v477_v51 = vld [vmem:[%s1583_s25 + $0xb0] sm:$0xff]  ;;  %v479_v52 = vld [vmem:[%s1583_s25 + $0xb8] sm:$0xff] }
  0x89   : >> { %444 = vst [vmem:[%s1579_s29 + $0x84] sm:$0xff] %v443_v43  ;;  %424 = vst [vmem:[%s1579_s29 + $0x34] sm:$0xff] %v399_v40  ;;  %v385_v53 = vld [vmem:[%s1583_s25] sm:$0xff]  ;;  %v387_v54 = vld [vmem:[%s1583_s25 + $0x8] sm:$0xff] }
  0x8a   : >> { %458 = vst [vmem:[%s1579_s29 + $0x58] sm:$0xff] %v409_v35  ;;  %460 = vst [vmem:[%s1579_s29 + $0x60] sm:$0xff] %v411_v36  ;;  %v389_v55 = vld [vmem:[%s1583_s25 + $0x10] sm:$0xff]  ;;  %v505_v56 = vld [vmem:[%s1583_s25 + $0xc0] sm:$0xff] }
  0x8b   : >> { %462 = vst [vmem:[%s1579_s29 + $0x68] sm:$0xff] %v413_v37  ;;  %446 = vst [vmem:[%s1579_s29 + $0x8c] sm:$0xff] %v445_v44  ;;  %v507_v57 = vld [vmem:[%s1583_s25 + $0xc8] sm:$0xff]  ;;  %v509_v58 = vld [vmem:[%s1583_s25 + $0xd0] sm:$0xff] }
  0x8c   : >> { %448 = vst [vmem:[%s1579_s29 + $0x94] sm:$0xff] %v447_v45  ;;  %392 = vst [vmem:[%s1579_s29 + $0x18] sm:$0xff] %v391_v46  ;;  %v511_v59 = vld [vmem:[%s1583_s25 + $0xd8] sm:$0xff]  ;;  %s2274_s25 = smov %s518_s9 }
  0x8d   : >> { %426 = vst [vmem:[%s1579_s29 + $0x3c] sm:$0xff] %v401_v41  ;;  %428 = vst [vmem:[%s1579_s29 + $0x44] sm:$0xff] %v1939_v32 }
  0x8e   : >> { %464 = vst [vmem:[%s1579_s29 + $0x70] sm:$0xff] %v415_v38  ;;  %466 = vst [vmem:[%s1579_s29 + $0x78] sm:$0xff] %v441_v42 }
  0x8f   : >> { %468 = vst [vmem:[%s1579_s29 + $0x80] sm:$0xff] %v443_v43  ;;  %482 = vst [vmem:[%s1579_s29 + $0x54] sm:$0xff] %v409_v35 }
  0x90   : >> { %484 = vst [vmem:[%s1579_s29 + $0x5c] sm:$0xff] %v411_v36  ;;  %486 = vst [vmem:[%s1579_s29 + $0x64] sm:$0xff] %v413_v37 }
  0x91   : >> { %394 = vst [vmem:[%s1579_s29 + $0x20] sm:$0xff] %v393_v47  ;;  %396 = vst [vmem:[%s1579_s29 + $0x28] sm:$0xff] %v395_v48 }
  0x92   : >> { %470 = vst [vmem:[%s1579_s29 + $0x88] sm:$0xff] %v445_v44  ;;  %472 = vst [vmem:[%s1579_s29 + $0x90] sm:$0xff] %v447_v45 }
  0x93   : >> { %474 = vst [vmem:[%s1579_s29 + $0x98] sm:$0xff] %v473_v49  ;;  %450 = vst [vmem:[%s1579_s29 + $0x38] sm:$0xff] %v401_v41 }
  0x94   : >> { %452 = vst [vmem:[%s1579_s29 + $0x40] sm:$0xff] %v1939_v32  ;;  %454 = vst [vmem:[%s1579_s29 + $0x48] sm:$0xff] %v1942_v33 }
  0x95   : >> { %488 = vst [vmem:[%s1579_s29 + $0x6c] sm:$0xff] %v415_v38  ;;  %490 = vst [vmem:[%s1579_s29 + $0x74] sm:$0xff] %v441_v42 }
  0x96   : >> { %492 = vst [vmem:[%s1579_s29 + $0x7c] sm:$0xff] %v443_v43  ;;  %476 = vst [vmem:[%s1579_s29 + $0xa0] sm:$0xff] %v475_v50 }
  0x97   : >> { %478 = vst [vmem:[%s1579_s29 + $0xa8] sm:$0xff] %v477_v51  ;;  %480 = vst [vmem:[%s1579_s29 + $0xb0] sm:$0xff] %v479_v52 }
  0x98   : >> { %418 = vst [vmem:[%s1579_s29 + $0x1c] sm:$0xff] %v393_v47  ;;  %420 = vst [vmem:[%s1579_s29 + $0x24] sm:$0xff] %v395_v48 }
  0x99   : >> { %422 = vst [vmem:[%s1579_s29 + $0x2c] sm:$0xff] %v1958_v39  ;;  %494 = vst [vmem:[%s1579_s29 + $0x84] sm:$0xff] %v445_v44  ;;  %381 = sbr.rel (!%p378_p12) target bundleno = 127 (0x7f), region = 181 }
  0x9a   : >> { %496 = vst [vmem:[%s1579_s29 + $0x8c] sm:$0xff] %v447_v45  ;;  %498 = vst [vmem:[%s1579_s29 + $0x94] sm:$0xff] %v473_v49 }
  0x9b   : >> { %386 = vst [vmem:[%s1579_s29] sm:$0xff] %v385_v53  ;;  %388 = vst [vmem:[%s1579_s29 + $0x8] sm:$0xff] %v387_v54 }
  0x9c   : >> { %390 = vst [vmem:[%s1579_s29 + $0x10] sm:$0xff] %v389_v55  ;;  %500 = vst [vmem:[%s1579_s29 + $0x9c] sm:$0xff] %v475_v50 }
  0x9d   : >> { %502 = vst [vmem:[%s1579_s29 + $0xa4] sm:$0xff] %v477_v51  ;;  %504 = vst [vmem:[%s1579_s29 + $0xac] sm:$0xff] %v479_v52 }
  0x9e   : >> { %506 = vst [vmem:[%s1579_s29 + $0xb4] sm:$0xff] %v505_v56  ;;  %508 = vst [vmem:[%s1579_s29 + $0xbc] sm:$0xff] %v507_v57 }
  0x9f   : >> { %510 = vst [vmem:[%s1579_s29 + $0xc4] sm:$0xff] %v509_v58  ;;  %512 = vst [vmem:[%s1579_s29 + $0xcc] sm:$0xff] %v511_v59  ;;  %s2273_s29 = smov %s519_s10 }
  0xa0 PF: > { %s2074_s24 = sand.u32 15, %s372_s27   ;;  %s1206_s19 = sshll.u32 %s1913_s5, 11 }
  0xa1   : > { %s524_s20 = sshra.s32 %s1206_s19, 4  ;;  %p1172_p13 = scmp.le.s32.totalorder %s2074_s24, 0 }
  0xa2   : > { %s2078_s1 = scalar_lea.vmem %s1693_s4, %s524_s20   ;;  %s2081_s10 = scalar_lea.vmem %s1697_s7, %s524_s20 [#allocation2]  }
  0xa3   : > { %1112 = sbr.rel (%p1172_p13) target bundleno = 180 (0xb4), region = 186  ;;  %s2276_s29 = smov (!%p1172_p13), %s2081_s10 }
  0xa4   : > { %s2277_s25 = smov (!%p1172_p13), %s2078_s1  ;;  %s2090_s26 = smov (!%p1172_p13), 0  }
  0xa5   : > { %s1605_s11 = smov (!%p1172_p13), 0  }
  0xaa LB: >> { %v540_v60 = vld [vmem:[%s1599_s25] sm:$0xff]  ;;  %s548_s27 = sadd.s32 1, %s1603_s26  ;;  %s534_s11 = sadd.s32 1, %s1607_s11   ;;  %s1607_s11 = sphi %s1605_s11, %s534_s11   ;;  %s1603_s26 = sphi %s2090_s26, %s2278_s26   ;;  %s1599_s25 = sphi %s2277_s25, %s553_s25   ;;  %s1595_s29 = sphi %s2276_s29, %s554_s29  }
  0xab   : >> { %v542_v61 = vld [vmem:[%s1599_s25 + $0x20] sm:$0xff]  ;;  %541 = vst [vmem:[%s1595_s29] sm:$0xff] %v540_v60  ;;  %p549_p0 = scmp.ge.s32.totalorder %s548_s27, %s2074_s24  ;;  %p533_p1 = scmp.ge.s32.totalorder %s534_s11, %s2074_s24 }
  0xac   : >> { %v544_v62 = vld [vmem:[%s1599_s25 + $0x40] sm:$0xff]  ;;  %543 = vst [vmem:[%s1595_s29 + $0x1c] sm:$0xff] %v542_v61 }
  0xad   : >> { %545 = vst [vmem:[%s1595_s29 + $0x38] sm:$0xff] %v544_v62  ;;  %v546_v63 = vld [vmem:[%s1599_s25 + $0x60] sm:$0xff]  ;;  %s2292_s27 = smov (%p549_p0, %s548_s27), 0  ;;  %536 = sbr.rel (!%p533_p1) target bundleno = 170 (0xaa), region = 192 }
  0xae   : >> { %547 = vst [vmem:[%s1595_s29 + $0x54] sm:$0xff] %v546_v63  ;;  %s1173_s5 = sshll.u32 %s2292_s27, 3  ;;  %s2278_s26 = smov %s2292_s27 }
  0xaf   : >> { %s553_s25 = scalar_lea.vmem %s2078_s1, %s1173_s5   ;;  %s554_s29 = scalar_lea.vmem %s2081_s10, %s1173_s5 [#allocation2]  }
  0xb4 PF: > { %s1609_s17 = smov 0  }
  0xb5   : > { %s555_s9 = sshllo.u32 %s1609_s17, %s1701_s8 }
  0xb6   : > { %v564_v0 = vld [vmem:[%s1906_s28] sm:%s555_s9] }
  0xb7   : > { %v566_v1 = vld [vmem:[%s1906_s28 + $0x20] sm:%s555_s9]  ;;  %565 = vst [vmem:[%s1909_s30] sm:%s555_s9] %v564_v0 }
  0xb8   : > { %567 = vst [vmem:[%s1909_s30 + $0x1c] sm:%s555_s9] %v566_v1  ;;  %v568_v2 = vld [vmem:[%s1906_s28 + $0x40] sm:%s555_s9] }
  0xb9   : > { %v570_v3 = vld [vmem:[%s1906_s28 + $0x60] sm:%s555_s9]  ;;  %569 = vst [vmem:[%s1909_s30 + $0x38] sm:%s555_s9] %v568_v2 }
  0xba   : > { %571 = vst [vmem:[%s1909_s30 + $0x54] sm:%s555_s9] %v570_v3 }
  0xbb PF: > { %p1175_p2 = scmp.ge.u32.totalorder %s1695_s6, 8 }
  0xbc   : > { %s1610_s1 = smov (!%p1175_p2), 0  }
  0xbd   : > { %158 = sbr.rel (%p1175_p2) target bundleno = 196 (0xc4), region = 36  ;;  %s159_s8 = sshllo.u32 (!%p1175_p2), %s1610_s1, %s1695_s6 }
  0xbe   : > { %v168_v4 = vld [vmem:[%s1693_s4] sm:%s159_s8] (!%p1175_p2) }
  0xbf   : > { %v170_v5 = vld [vmem:[%s1693_s4 + $0x20] sm:%s159_s8] (!%p1175_p2)  ;;  %169 = vst [vmem:[%s1697_s7] sm:%s159_s8] (!%p1175_p2), %v168_v4 }
  0xc0   : > { %171 = vst [vmem:[%s1697_s7 + $0x1c] sm:%s159_s8] (!%p1175_p2), %v170_v5  ;;  %v172_v6 = vld [vmem:[%s1693_s4 + $0x40] sm:%s159_s8] (!%p1175_p2) }
  0xc1   : > { %v174_v7 = vld [vmem:[%s1693_s4 + $0x60] sm:%s159_s8] (!%p1175_p2)  ;;  %173 = vst [vmem:[%s1697_s7 + $0x38] sm:%s159_s8] (!%p1175_p2), %v172_v6 }
  0xc2   : > { %175 = vst [vmem:[%s1697_s7 + $0x54] sm:%s159_s8] (!%p1175_p2), %v174_v7 }
  0xc4 PF: > { %p1176_p3 = scmp.ge.s32.totalorder %s1543_s15, 1  ;;  %p590_p4 = scmp.lt.s32.totalorder %s1543_s15, 3 }
  0xc6   : > { %p591_p5 = pnand %p1176_p3, %p590_p4 }
  0xc7   : > { %s597_s6 = sand.u32 (!%p591_p5), 1, %s1535_s13   ;;  %v1611_v8 = vmov (!%p591_p5), 0   ;;  %v652_v13 = vld [vmem:[%s2253_s0] sm:$0xff] (!%p591_p5)  ;;  %v653_v14 = vld [vmem:[%s2253_s0 + $0x8] sm:$0xff] (!%p591_p5)  ;;  %vm780_vm0 = vcmask (!%p591_p5), 261120   ;;  %v1612_v23 = vmov (!%p591_p5), 0.0   ;;  %v673_v27 = vlaneseq (!%p591_p5) }
  0xc8   : > { %594 = sbr.rel (%p591_p5) target bundleno = 468 (0x1d4), region = 94  ;;  %816 = vmatprep.mubr.bf16.mxu0 (!%p591_p5), %v1611_v8  ;;  %859 = vmatprep.mubr.bf16.mxu1 (!%p591_p5), %v1611_v8  ;;  %v654_v20 = vpack.c.bf16 (!%p591_p5), %v653_v14, %v652_v13  ;;  %vm1613_vm1 = vmmov (!%p591_p5), 0   ;;  %s2185_s27 = scalar_lea.sflag (!%p591_p5), [#allocation4], %s597_s6 }
  0xc9   : > { %s2129_s28 = smul.u32 (!%p591_p5), 112, %s597_s6  ;;  %v674_v28 = vshrl.u32 (!%p591_p5), %v673_v27, 7 }
  0xca   : > { %s2159_s20 = smul.u32 (!%p591_p5), 7, %s1658_s16 }
  0xcb   : > { %s2132_s4 = scalar_lea.vmem (!%p591_p5), [#allocation2], %s2129_s28  ;;  %v675_v29 = vsub.s32 (!%p591_p5), 0, %v674_v28  ;;  %v683_v30 = vsub.s32 (!%p591_p5), 2, %v674_v28  ;;  %v679_v32 = vsub.s32 (!%p591_p5), 1, %v674_v28  ;;  %v687_v33 = vsub.s32 (!%p591_p5), 3, %v674_v28  ;;  %s2167_s11 = scalar_lea.vmem (!%p591_p5), [#allocation3], %s2129_s28 }
  0xcc   : > { %v1397_v9 = vld [vmem:[%s2132_s4 + $0x4] ss:$28 sps:$4 sm:$0xff] (!%p591_p5)   ;;  %v1399_v10 = vld [vmem:[%s2132_s4 + $0xc] ss:$28 sps:$4 sm:$0xff] (!%p591_p5)   ;;  %v1403_v15 = vld [vmem:[%s2132_s4 + $0x3c] ss:$28 sps:$4 sm:$0xff] (!%p591_p5)  }
  0xcd   : > { %784 = vmatprep.subr.bf16.mxu0 (!%p591_p5), %v1397_v9  ;;  %v1401_v11 = vld [vmem:[%s2132_s4] ss:$28 sps:$4 sm:$0xff] (!%p591_p5)   ;;  %v1402_v12 = vld [vmem:[%s2132_s4 + $0x8] ss:$28 sps:$4 sm:$0xff] (!%p591_p5)   ;;  %827 = vmatprep.subr.bf16.mxu1 (!%p591_p5), %v1399_v10  ;;  %v1407_v17 = vld [vmem:[%s2132_s4 + $0x38] ss:$28 sps:$4 sm:$0xff] (!%p591_p5)  }
  0xce   : > { %785 = vmatpush1.bf16.msra.mxu0 (!%p591_p5), %v1401_v11  ;;  %828 = vmatpush1.bf16.msra.mxu1 (!%p591_p5), %v1402_v12  ;;  %v1405_v16 = vld [vmem:[%s2132_s4 + $0x44] ss:$28 sps:$4 sm:$0xff] (!%p591_p5)   ;;  %v1411_v19 = vld [vmem:[%s2132_s4 + $0x14] ss:$28 sps:$4 sm:$0xff] (!%p591_p5)   ;;  %v1415_v24 = vld [vmem:[%s2132_s4 + $0x4c] ss:$28 sps:$4 sm:$0xff] (!%p591_p5)  }
  0xcf   : > { %786 = vmatprep.subr.bf16.mxu0 %v1403_v15  ;;  %v1408_v18 = vld [vmem:[%s2132_s4 + $0x40] ss:$28 sps:$4 sm:$0xff]   ;;  %829 = vmatprep.subr.bf16.mxu1 %v1405_v16  ;;  %v1409_v21 = vld [vmem:[%s2132_s4 + $0x10] ss:$28 sps:$4 sm:$0xff]   ;;  %v1412_v22 = vld [vmem:[%s2132_s4 + $0x18] ss:$28 sps:$4 sm:$0xff]  }
  0xd0   : > { %v1413_v25 = vld [vmem:[%s2132_s4 + $0x48] ss:$28 sps:$4 sm:$0xff]   ;;  %v1416_v26 = vld [vmem:[%s2132_s4 + $0x50] ss:$28 sps:$4 sm:$0xff]   ;;  %p638_p7 = scmp.lt.s32.totalorder %s2159_s20, 7  ;;  %v691_v44 = vsub.s32 4, %v674_v28 }
  0xd1   : > { %v699_v45 = vsub.s32 6, %v674_v28  ;;  %v695_v50 = vsub.s32 5, %v674_v28  ;;  %s977_s5 = ssub.s32 (%p1676_p6), 8, %s2159_s20 }
  0xd2   : > { %787 = vmatpush1.bf16.msra.mxu0 %v1407_v17  ;;  %830 = vmatpush1.bf16.msra.mxu1 %v1408_v18  ;;  %s639_s10 = scalar_select %p638_p7, %s2159_s20, 7 }
  0xd3   : > { %870 = vmatprep.subr.bf16.mxu0 %v1411_v19  ;;  %1214 = vmatprep.subr.bf16.mxu1 %v1612_v23  ;;  %p978_p10 = scmp.lt.s32.totalorder (%p1676_p6), %s977_s5, 7 }
  0xd4   : > { %s640_s26 = scalar_lea.vmem %s2255_s2, %s639_s10 }
  0xd5   : > { %1191 = vmatmul.mubr.msk.bf16.vlgmr.msra.gmra.mrb[0].mxu0 %vm780_vm0, %v654_v20  ;;  %1192 = vmatmul.mubr.msk.bf16.vlgmr.msra.gmra.mrb[0].mxu1 %vm780_vm0, %v654_v20  ;;  %v671_v31 = vld [vmem:[%s640_s26] sm:$0xff] }
  0xd6   : > { %871 = vmatpush1.bf16.msra.mxu0 %v1409_v21  ;;  %1215 = vmatpush3.bf16.msra.mxu1 %v1412_v22  ;;  %v676_v34 = vrot.slane %v671_v31, %v675_v29  ;;  %v684_v35 = vrot.slane %v671_v31, %v683_v30  ;;  %v680_v36 = vrot.slane %v671_v31, %v679_v32 }
  0xd7   : > { %872 = vmatprep.subr.bf16.mxu0 %v1415_v24  ;;  %1216 = vmatprep.subr.bf16.mxu1 %v1612_v23  ;;  %v688_v37 = vrot.slane %v671_v31, %v687_v33  ;;  %v692_v57 = vrot.slane %v671_v31, %v691_v44  ;;  %v700_v58 = vrot.slane %v671_v31, %v699_v45 }
  0xd8   : > { %902 = vmatprep.mubr.bf16.mxu0 %v1611_v8  ;;  %1218 = vmatprep.mubr.msk.bf16.mxu1 %vm1613_vm1, %v1612_v23  ;;  %v696_v59 = vrot.slane %v671_v31, %v695_v50 }
  0xda   : > { %873 = vmatpush1.bf16.msra.mxu0 %v1413_v25  ;;  %1217 = vmatpush3.bf16.msra.mxu1 %v1416_v26 }
  0xdd   : > { %1193 = vmatmul.mubr.msk.bf16.vlgmr.msra.gmra.mrb[4].mxu0 %vm780_vm0, %v654_v20  ;;  %1219 = vmatmul.mubr.msk.bf16.vlgmr.msra.gmra.mrb[4].mxu1 %vm780_vm0, %v654_v20 }
 0x1a8   : > { %v818_v38 = vpop.f32.mrb[0].mxu0  ;;  %v861_v39 = vpop.f32.mrb[0].mxu1 }
 0x1a9   : > { %v819_v40 = vadd.f32 %v818_v38, %v676_v34  ;;  %v862_v41 = vadd.f32 %v861_v39, %v684_v35  ;;  %v820_v42 = vpop.f32.mrb[1].mxu0  ;;  %v863_v43 = vpop.f32.mrb[1].mxu1 }
 0x1aa   : > { %v821_v46 = vadd.f32 %v820_v42, %v680_v36  ;;  %v864_v47 = vadd.f32 %v863_v43, %v688_v37  ;;  %v822_v48 = vpop.f32.mrb[2].mxu0  ;;  %v865_v49 = vpop.f32.mrb[2].mxu1 }
 0x1ab   : > { %954 = vst [vmem:[%s2167_s11] sm:$0xff] %v819_v40  ;;  %956 = vst [vmem:[%s2167_s11 + $0x10] sm:$0xff] %v862_v41  ;;  %v823_v51 = vadd.f32 %v822_v48, %v676_v34  ;;  %v866_v52 = vadd.f32 %v865_v49, %v684_v35  ;;  %v824_v53 = vpop.f32.mrb[3].mxu0  ;;  %v867_v54 = vpop.f32.mrb[3].mxu1 }
 0x1ac   : > { %955 = vst [vmem:[%s2167_s11 + $0x8] sm:$0xff] %v821_v46  ;;  %957 = vst [vmem:[%s2167_s11 + $0x18] sm:$0xff] %v864_v47  ;;  %v825_v55 = vadd.f32 %v824_v53, %v680_v36  ;;  %v868_v56 = vadd.f32 %v867_v54, %v688_v37 }
 0x1ad   : > { %961 = vst [vmem:[%s2167_s11 + $0x38] sm:$0xff] %v823_v51  ;;  %963 = vst [vmem:[%s2167_s11 + $0x48] sm:$0xff] %v866_v52 }
 0x1ae   : > { %962 = vst [vmem:[%s2167_s11 + $0x40] sm:$0xff] %v825_v55  ;;  %964 = vst [vmem:[%s2167_s11 + $0x50] sm:$0xff] %v868_v56 }
 0x1b0   : > { %v904_v60 = vpop.f32.mrb[4].mxu0  ;;  %v947_v61 = vpop.f32.mrb[4].mxu1  ;;  %975 = sbr.rel (!%p1676_p6) target bundleno = 468 (0x1d4), region = 102 }
 0x1b1   : > { %v905_v62 = vadd.f32 %v904_v60, %v692_v57  ;;  %v948_v63 = vadd.f32 %v947_v61, %v700_v58  ;;  %v906_v0 = vpop.f32.mrb[5].mxu0  ;;  %v1220_v1 = vpop.f32.mrb[5].mxu1 }
 0x1b2   : > { %v907_v2 = vadd.f32 %v906_v0, %v696_v59  ;;  %v908_v3 = vpop.f32.mrb[6].mxu0  ;;  %v950_v4 = vpop.f32.mrb[6].mxu1 }
 0x1b3   : > { %958 = vst [vmem:[%s2167_s11 + $0x20] sm:$0xff] %v905_v62  ;;  %960 = vst [vmem:[%s2167_s11 + $0x30] sm:$0xff] %v948_v63  ;;  %v909_v5 = vadd.f32 %v908_v3, %v692_v57  ;;  %v951_v6 = vadd.f32 %v950_v4, %v700_v58  ;;  %v910_v7 = vpop.f32.mrb[7].mxu0  ;;  %v1221_v8 = vpop.f32.mrb[7].mxu1 }
 0x1b4   : > { %959 = vst [vmem:[%s2167_s11 + $0x28] sm:$0xff] %v907_v2  ;;  %v911_v9 = vadd.f32 %v910_v7, %v696_v59 }
 0x1b5   : > { %965 = vst [vmem:[%s2167_s11 + $0x58] sm:$0xff] %v909_v5  ;;  %967 = vst [vmem:[%s2167_s11 + $0x68] sm:$0xff] %v951_v6 }
 0x1b6   : > { %966 = vst [vmem:[%s2167_s11 + $0x60] sm:$0xff] %v911_v9 }
 0x1b7   : > { %s2294_s5 = smov (!%p978_p10, %s977_s5), 7 }
 0x1b8   : > { %s2193_s17 = sshll.u32 %s2294_s5, 8 }
 0x1b9   : > { %s982_s9 = ssub.s32 1792, %s2193_s17 }
 0x1ba   : > { %983 = vsyncadd %s2185_s27, %s982_s9  ;;  %p1196_p11 = scmp.ne.s32.totalorder %s2193_s17, 0  ;;  %s1208_s22 = smul.u32 896, %s1658_s16 }
 0x1bb   : > { %s1198_s1 = sshll.u32 %s2294_s5, 3  ;;  %s989_s8 = sshll.u32 %s2167_s11, 4  ;;  %s2206_s8 = int_to_ptr.vmem [resolvable:$true] %s989_s8 }
 0x1bc   : > { %s2204_s4 = scalar_lea.hbm %s2256_s3, %s1208_s22  ;;  %s1417_s7 = scalar_lea.vmem %s2206_s8, %s2193_s17 }
 0x1bd   : > { %p1418_p6 = scmp.ne.s32.totalorder %s2206_s8, %s1417_s7  ;;  %s1614_s30 = smov [#allocation3]  }
 0x1be   : > { %s1421_s24 = sshll.u32 %s1614_s30, 4  ;;  %s1422_s24 = int_to_ptr.vmem [resolvable:$false] %s1421_s24 }
 0x1bf   : > { %p1419_p12 = pnand %p1418_p6, %p1196_p11  ;;  %s1423_s16 = scalar_lea.vmem %s1422_s24, 3584 }
 0x1c0   : > { %p1424_p0 = scmp.lt.s32.totalorder %s2206_s8, %s1422_s24  ;;  %p1425_p1 = scmp.lt.s32.totalorder %s1423_s16, %s1417_s7 }
 0x1c1   : > { %p1420_p13 = pneg %p1419_p12 }
 0x1c2   : > { %p1426_p2 = por %p1425_p1, %p1424_p0 }
 0x1c4   : > { %p1427_p3 = pnand %p1426_p2, %p1420_p13 }
 0x1c6   : > { %1430 = shalt.err (!%p1427_p3)
}
 0x1c7   : > { %s1431_s19 = scalar_lea.hbm %s2204_s4, %s2193_s17  ;;  %s1435_s29 = scalar_lea.hbm %s2256_s3, 2048 }
 0x1c8   : > { %p1432_p4 = scmp.ne.s32.totalorder %s2204_s4, %s1431_s19  ;;  %p1436_p10 = scmp.lt.u32.totalorder %s2204_s4, %s2256_s3 }
 0x1c9   : > { %p1437_p6 = scmp.lt.u32.totalorder %s1435_s29, %s1431_s19  ;;  %p1439_p13 = scmp.lt.u32.totalorder %s1431_s19, %s2204_s4 }
 0x1ca   : > { %p1433_p5 = pnand %p1432_p4, %p1196_p11 }
 0x1cb   : > { %p1438_p12 = por %p1437_p6, %p1436_p10 }
 0x1cc   : > { %p1434_p7 = pneg %p1433_p5 }
 0x1cd   : > { %p1440_p0 = por %p1439_p13, %p1438_p12 }
 0x1cf   : > { %p1441_p1 = pnand %p1440_p0, %p1434_p7 }
 0x1d1   : > { %1444 = shalt.err (!%p1441_p1)
}
 0x1d2   : > { %s1615_s11 = smov 896   ;;  %s1616_s9 = smov 1024  }
 0x1d3   : > { %995 = dma.vmem_to_hbm [thread:$0]  (%p1196_p11), %s2206_s8, %s2193_s17, %s2204_s4, %s2185_s27, %s1615_s11, %s1616_s9, %s1198_s1  }
 0x1d4 PF: > { %s1004_s22 = sand.u32 1, %s1531_s12   ;;  %p1226_p2 = pnand %p1150_p9, %p1680_p8 }
 0x1d5   : > { %s1005_s6 = scalar_lea.sflag [#allocation4], %s1004_s22 }
 0x1d6   : > { %1526 = dma.done.wait (!%p1226_p2), %s1005_s6, 1792  }
 0x1d7   : > { %1528 = vsyncadd (!%p1226_p2), %s1005_s6, 4294965504  ;;  %p13_p3 = scmp.ge.s32.totalorder %s1662_s18, 4   ;;  %s2279_s12 = smov %s1535_s13 }
 0x1d8   : > { %s2280_s13 = smov %s1539_s14  ;;  %s2281_s14 = smov %s1674_s21 }
 0x1d9   : > { %s2282_s15 = smov %s1662_s18  ;;  %15 = sbr.rel (!%p13_p3) target bundleno = 5 (0x5), region = 203 }
 0x1e0   :  { %1010 = vsyncpa [#allocation4], 1 }
 0x1e1   :  { %1012 = vsyncpa [#allocation4 + $0x1], 1 }

// kernel: decoder_rnn_forward.2
= control target key start
LH: loop header
LB: loop body
LE: loop exit
PB: predicated region body
PF: predicated region fallthrough
CT: control target
= control target key end

     0   :  { %v69_v3 = vlaneseq  ;;  %v1792_v5 = vmov 0.0|0.0   ;;  %v1793_v9 = vmov 1983009808   ;;  %vm31_vm0 = vcmask 254976   ;;  %s2156_s0 = inlined_call_operand.vmem [shape: f32[8,2,32], index: 0, kind: input, shape index: {}]   ;;  %s2157_s1 = inlined_call_operand.vmem [shape: f32[2,32], index: 1, kind: input, shape index: {}]   ;;  %s2158_s2 = inlined_call_operand.vmem [shape: f32[32,96], index: 2, kind: input, shape index: {}]   ;;  %s2159_s3 = inlined_call_operand.vmem [shape: f32[32,96], index: 3, kind: input, shape index: {}]   ;;  %s2160_s4 = inlined_call_operand.vmem [shape: f32[1,96], index: 4, kind: input, shape index: {}]   ;;  %s2161_s5 = inlined_call_operand.vmem [shape: f32[1,32], index: 5, kind: input, shape index: {}]   ;;  %s2162_s6 = inlined_call_operand.vmem [shape: f32[2,8,32], index: 6, kind: output, shape index: {0}]   ;;  %s2163_s7 = inlined_call_operand.hbm [shape: f32[2,32], index: 7, kind: output, shape index: {1}]  }
   0x1   :  { %v45_v0 = vld [vmem:[%s2158_s2] sm:$0xff]  ;;  %v46_v1 = vld [vmem:[%s2158_s2 + $0x8] sm:$0xff]  ;;  %v47_v2 = vld [vmem:[%s2158_s2 + $0x10] sm:$0xff]  ;;  %1632 = vmatprep.subr.bf16.mxu1 %v1792_v5  ;;  %v67_v10 = vunpack.c.l.s4 %v1793_v9 }
   0x2   :  { %v1624_v4 = vpack.c.bf16 %v46_v1, %v45_v0  ;;  %v48_v6 = vld [vmem:[%s2158_s2 + $0x18] sm:$0xff]  ;;  %v33_v7 = vld [vmem:[%s2159_s3] sm:$0xff]  ;;  %v34_v8 = vld [vmem:[%s2159_s3 + $0x8] sm:$0xff]  ;;  %v1873_v19 = vshrl.u32 %v69_v3, 7 }
   0x3   :  { %v1628_v11 = vpack.c.bf16 %v48_v6, %v47_v2  ;;  %v1859_v12 = vpack.c.bf16 %v34_v8, %v33_v7  ;;  %v37_v13 = vld [vmem:[%s2156_s0] sm:$0x3]  ;;  %v38_v14 = vld [vmem:[%s2156_s0 + $0x2] sm:$0x3]  ;;  %v39_v15 = vld [vmem:[%s2156_s0 + $0x4] sm:$0x3]  ;;  %v68_v18 = vunpack.c.0.s8 %v67_v10 }
   0x4   :  { %1625 = vmatprep.subr.bf16.mxu0 %v1624_v4  ;;  %v40_v16 = vld [vmem:[%s2156_s0 + $0x6] sm:$0x3]  ;;  %v64_v17 = vcombine.low %v37_v13, %v38_v14  ;;  %v41_v20 = vld [vmem:[%s2156_s0 + $0x8] sm:$0x3]  ;;  %v35_v21 = vld [vmem:[%s2159_s3 + $0x10] sm:$0xff] }
   0x5   :  { %1627 = vmatpush3.bf16.msra.mxu0 %v1624_v4  ;;  %1634 = vmatpush3.bf16.msra.mxu1 %v1859_v12  ;;  %v65_v22 = vcombine.low %v39_v15, %v40_v16  ;;  %v42_v23 = vld [vmem:[%s2156_s0 + $0xa] sm:$0x3]  ;;  %v43_v24 = vld [vmem:[%s2156_s0 + $0xc] sm:$0x3]  ;;  %v44_v25 = vld [vmem:[%s2156_s0 + $0xe] sm:$0x3]  ;;  %v1892_v26 = vsub.s32 %v68_v18, %v1873_v19 }
   0x6   :  { %1629 = vmatprep.subr.bf16.mxu0 %v1628_v11  ;;  %1635 = vmatprep.subr.bf16.mxu1 %v1792_v5  ;;  %v81_v27 = vcombine.low %v41_v20, %v42_v23  ;;  %v82_v28 = vcombine.low %v43_v24, %v44_v25  ;;  %v36_v29 = vld [vmem:[%s2159_s3 + $0x18] sm:$0xff]  ;;  %v30_v30 = vld [vmem:[%s2157_s1] sm:$0x3] }
   0x7   :  { %v1901_v31 = vpack.c.bf16 %v36_v29, %v35_v21  ;;  %v1454_v32 = vld [vmem:[%s2161_s5] ss:$0 sm:$0xff] }
   0x8   :  { %13 = vsyncpa [#allocation6], 0  ;;  %v72_v33 = vrot.slane %v64_v17, %v1892_v26  ;;  %v79_v34 = vrot.slane %v65_v22, %v1892_v26  ;;  %v89_v35 = vrot.slane %v81_v27, %v1892_v26  ;;  %v96_v36 = vrot.slane %v82_v28, %v1892_v26  ;;  %32 = vst.msk [vmem:[#allocation5] sm:$0x3] %vm31_vm0, %v30_v30  ;;  %s1796_s1 = smov 64   ;;  %s1797_s12 = smov 96  }
   0x9   :  { %vm1794_vm1 = vmmov 0   ;;  %v1795_v37 = vmov 0.0   ;;  %1631 = vmatpush3.bf16.msra.mxu0 %v1628_v11  ;;  %vm98_vm2 = vcmask 261120   ;;  %1637 = vmatpush3.bf16.msra.mxu1 %v1901_v31  ;;  %v1451_v41 = vld [vmem:[%s2160_s4] ss:$0 sm:$0xff]  ;;  %vm491_vm3 = vcmask 253952  }
   0xa   :  { %1544 = vmatprep.mubr.msk.f32.mxu1 %vm1794_vm1, %v1795_v37  ;;  %v80_v38 = vcombine.low %v72_v33, %v79_v34  ;;  %v97_v39 = vcombine.low %v89_v35, %v96_v36  ;;  %452 = vrot.lane.b32.xlu0 %v1454_v32, %s1796_s1  ;;  %v1798_v33 = vmov 1966171168  }
   0xb   :  { %1638 = vmatprep.subr.bf16.mxu0 %v1792_v5  ;;  %1644 = vmatprep.subr.bf16.mxu1 %v1792_v5  ;;  %v468_v34 = vunpack.c.l.s4 %v1798_v33 }
   0xc   :  { %1533 = vmatprep.mubr.msk.f32.mxu0 %vm98_vm2, %v80_v38 }
   0xd   :  { %1534 = vmatmul.mubr.msk.f32.vlgmr.msra.gmra.mrb[0].mxu0 %vm98_vm2, %v97_v39  ;;  %v469_v38 = vunpack.c.0.s8 %v468_v34 }
   0xe   :  { %1640 = vmatpush3.bf16.msra.mxu0 %v1859_v12  ;;  %1555 = vmatprep.mubr.msk.f32.mxu0 %vm1794_vm1, %v1795_v37 }
   0xf   :  { %v1922_v40 = vld [vmem:[#allocation5] sm:$0x3]  ;;  %1641 = vmatprep.subr.bf16.mxu0 %v1792_v5 }
  0x10   :  { %1545 = vmatmul.mubr.msk.f32.vlgmr.msra.gmra.mrb[0].mxu1 %vm98_vm2, %v1922_v40 }
  0x11   :  { %1646 = vmatpush3.bf16.msra.mxu1 %v1859_v12  ;;  %1566 = vmatprep.mubr.msk.f32.mxu1 %vm1794_vm1, %v1795_v37 }
  0x12   :  { %1643 = vmatpush3.bf16.msra.mxu0 %v1901_v31  ;;  %1647 = vmatprep.subr.bf16.mxu1 %v1792_v5 }
  0x13   :  { %1650 = vmatprep.subr.bf16.mxu0 %v1792_v5 }
  0x15   :  { %1649 = vmatpush3.bf16.msra.mxu1 %v1901_v31 }
  0x16   :  { %1656 = vmatprep.subr.bf16.mxu1 %v1792_v5 }
  0x7c   :  { %v1943_v53 = vpop.permute.xlu0 %452 }
  0xe0   :  { %v1535_v42 = vpop.f32.mrb[0].mxu0 }
  0xe1   :  { %v175_v43 = vadd.f32 %v1535_v42, %v1451_v41  ;;  %v169_v44 = vpop.f32.mrb[1].mxu0 }
  0xe2   :  { %v170_v45 = vadd.f32 %v1451_v41, %v169_v44 }
  0xe3   :  { %v197_v46 = vcombine.high %v175_v43, %v175_v43  ;;  %v204_v47 = vrot.slane %v175_v43, %v1892_v26  ;;  %v427_v48 = vpop.f32.mrb[0].mxu1  ;;  %v1991_v43 = vsub.s32 %v469_v38, %v1873_v19 }
  0xe4   :  { %v180_v49 = vcombine.high %v170_v45, %v170_v45  ;;  %v187_v50 = vrot.slane %v170_v45, %v1892_v26  ;;  %441 = vrot.lane.b32.xlu1 %v427_v48, %s1797_s12  ;;  %v1546_v51 = vpop.f32.mrb[1].mxu1  ;;  %v455_v59 = vadd.f32 %v1943_v53, %v427_v48 }
  0xe5   :  { %v211_v52 = vrot.slane %v197_v46, %v1892_v26  ;;  %227 = vst.msk [vmem:[#allocation2 + $0x8] sm:$0x3] %vm31_vm0, %v204_v47  ;;  %v212_v54 = vcombine.high %v204_v47, %v204_v47  ;;  %v265_v0 = vrot.slane %v204_v47, %v1892_v26 }
  0xe6   :  { %v194_v55 = vrot.slane %v180_v49, %v1892_v26  ;;  %223 = vst.msk [vmem:[#allocation2] sm:$0x3] %vm31_vm0, %v187_v50  ;;  %v237_v56 = vrot.slane %v187_v50, %v1892_v26  ;;  %v195_v57 = vcombine.high %v187_v50, %v187_v50 }
  0xe7   :  { %229 = vst.msk [vmem:[#allocation2 + $0xc] sm:$0x3] %vm31_vm0, %v211_v52  ;;  %228 = vst.msk [vmem:[#allocation2 + $0xa] sm:$0x3] %vm31_vm0, %v212_v54  ;;  %v213_v58 = vcombine.high %v211_v52, %v211_v52  ;;  %v272_v1 = vrot.slane %v212_v54, %v1892_v26  ;;  %v279_v2 = vrot.slane %v211_v52, %v1892_v26 }
  0xe8   :  { %225 = vst.msk [vmem:[#allocation2 + $0x4] sm:$0x3] %vm31_vm0, %v194_v55  ;;  %287 = vrot.lane.b32.xlu0 %v237_v56, %s1797_s12  ;;  %319 = vrot.lane.b32.xlu1 %v237_v56, %s1796_s1  ;;  %224 = vst.msk [vmem:[#allocation2 + $0x2] sm:$0x3] %vm31_vm0, %v195_v57  ;;  %v196_v60 = vcombine.high %v194_v55, %v194_v55  ;;  %v244_v61 = vrot.slane %v195_v57, %v1892_v26 }
  0xe9   :  { %230 = vst.msk [vmem:[#allocation2 + $0xe] sm:$0x3] %vm31_vm0, %v213_v58  ;;  %v251_v62 = vrot.slane %v194_v55, %v1892_v26  ;;  %v286_v3 = vrot.slane %v213_v58, %v1892_v26 }
  0xea   :  { %226 = vst.msk [vmem:[#allocation2 + $0x6] sm:$0x3] %vm31_vm0, %v196_v60  ;;  %v258_v63 = vrot.slane %v196_v60, %v1892_v26 }
  0xec   :  { %289 = vrot.lane.b32.xlu1 %v244_v61, %s1797_s12  ;;  %457 = vrot.lane.b32.xlu0 %v455_v59, %s1796_s1 }
  0xed   :  { %v431_v4 = vld [vmem:[#allocation2] sm:$0x3] }
  0xee   :  { %v432_v6 = vadd.f32 %v431_v4, %v427_v48 }
  0xef   :  { %v567_v57 = vld [vmem:[#allocation2 + $0x2] sm:$0x3] }
  0xf0   :  { %321 = vrot.lane.b32.xlu1 %v244_v61, %s1796_s1  ;;  %v1456_v7 = vmul.f32 -1.442695, %v432_v6 }
  0xf2   :  { %1688 = vpow2.f32 %v1456_v7 }
  0xf4   :  { %291 = vrot.lane.b32.xlu1 %v251_v62, %s1797_s12 }
  0xf8   :  { %323 = vrot.lane.b32.xlu1 %v251_v62, %s1796_s1 }
  0xfc   :  { %293 = vrot.lane.b32.xlu1 %v258_v63, %s1797_s12  ;;  %v1689_v9 = vpop.eup %1688 }
  0xfd   :  { %v436_v13 = vadd.f32 1.0, %v1689_v9 }
  0xff   :  { %1690 = vrcp.f32 %v436_v13 }
 0x100   :  { %325 = vrot.lane.b32.xlu1 %v258_v63, %s1796_s1 }
 0x104   :  { %295 = vrot.lane.b32.xlu1 %v265_v0, %s1797_s12 }
 0x108   :  { %327 = vrot.lane.b32.xlu1 %v265_v0, %s1796_s1 }
 0x109   :  { %v1691_v22 = vpop.eup %1690 }
 0x10c   :  { %297 = vrot.lane.b32.xlu1 %v272_v1, %s1797_s12 }
 0x110   :  { %329 = vrot.lane.b32.xlu1 %v272_v1, %s1796_s1 }
 0x114   :  { %299 = vrot.lane.b32.xlu1 %v279_v2, %s1797_s12 }
 0x118   :  { %331 = vrot.lane.b32.xlu1 %v279_v2, %s1796_s1 }
 0x11c   :  { %301 = vrot.lane.b32.xlu1 %v286_v3, %s1797_s12 }
 0x120   :  { %333 = vrot.lane.b32.xlu1 %v286_v3, %s1796_s1 }
 0x156   :  { %v442_v8 = vpop.permute.xlu1 %441 }
 0x15a   :  { %v288_v10 = vpop.permute.xlu0 %287  ;;  %v320_v11 = vpop.permute.xlu1 %319 }
 0x15b   :  { %311 = vst.msk [vmem:[#allocation3] sm:$0x3] %vm31_vm0, %v288_v10  ;;  %343 = vst.msk [vmem:[#allocation4] sm:$0x3] %vm31_vm0, %v320_v11 }
 0x15e   :  { %v290_v14 = vpop.permute.xlu1 %289  ;;  %v458_v21 = vpop.permute.xlu0 %457 }
 0x15f   :  { %312 = vst.msk [vmem:[#allocation3 + $0x2] sm:$0x3] %vm31_vm0, %v290_v14  ;;  %v460_v24 = vmul.f32 %v1691_v22, %v458_v21 }
 0x162   :  { %v322_v15 = vpop.permute.xlu1 %321  ;;  %v439_v16 = vld [vmem:[#allocation3] sm:$0x3]  ;;  %v451_v23 = vld [vmem:[#allocation4] sm:$0x3] }
 0x163   :  { %344 = vst.msk [vmem:[#allocation4 + $0x2] sm:$0x3] %vm31_vm0, %v322_v15  ;;  %v444_v17 = vadd.f32 %v442_v8, %v439_v16  ;;  %v461_v26 = vadd.f32 %v460_v24, %v451_v23  ;;  %v701_v24 = vld [vmem:[#allocation2 + $0x4] sm:$0x3] }
 0x165   :  { %v1457_v18 = vmul.f32 -1.442695, %v444_v17 }
 0x166   :  { %v292_v20 = vpop.permute.xlu1 %291  ;;  %v576_v62 = vld [vmem:[#allocation3 + $0x2] sm:$0x3] }
 0x167   :  { %313 = vst.msk [vmem:[#allocation3 + $0x4] sm:$0x3] %vm31_vm0, %v292_v20  ;;  %1692 = vpow2.f32 %v1457_v18 }
 0x168   :  { %1694 = vtanh.f32 %v461_v26 }
 0x16a   :  { %v324_v25 = vpop.permute.xlu1 %323  ;;  %v589_v6 = vld [vmem:[#allocation4 + $0x2] sm:$0x3] }
 0x16b   :  { %345 = vst.msk [vmem:[#allocation4 + $0x4] sm:$0x3] %vm31_vm0, %v324_v25 }
 0x16e   :  { %v294_v27 = vpop.permute.xlu1 %293 }
 0x16f   :  { %314 = vst.msk [vmem:[#allocation3 + $0x6] sm:$0x3] %vm31_vm0, %v294_v27 }
 0x171   :  { %v1693_v28 = vpop.eup %1692 }
 0x172   :  { %v326_v29 = vpop.permute.xlu1 %325  ;;  %v448_v30 = vadd.f32 1.0, %v1693_v28  ;;  %v1695_v35 = vpop.eup %1694  ;;  %v723_v38 = vld [vmem:[#allocation4 + $0x4] sm:$0x3] }
 0x173   :  { %346 = vst.msk [vmem:[#allocation4 + $0x6] sm:$0x3] %vm31_vm0, %v326_v29  ;;  %v463_v39 = vsub.f32 %v1922_v40, %v1695_v35  ;;  %v710_v29 = vld [vmem:[#allocation3 + $0x4] sm:$0x3] }
 0x174   :  { %1696 = vrcp.f32 %v448_v30 }
 0x176   :  { %v296_v32 = vpop.permute.xlu1 %295 }
 0x177   :  { %315 = vst.msk [vmem:[#allocation3 + $0x8] sm:$0x3] %vm31_vm0, %v296_v32 }
 0x17a   :  { %v328_v36 = vpop.permute.xlu1 %327 }
 0x17b   :  { %347 = vst.msk [vmem:[#allocation4 + $0x8] sm:$0x3] %vm31_vm0, %v328_v36 }
 0x17e   :  { %v1697_v41 = vpop.eup %1696  ;;  %v298_v42 = vpop.permute.xlu1 %297 }
 0x17f   :  { %316 = vst.msk [vmem:[#allocation3 + $0xa] sm:$0x3] %vm31_vm0, %v298_v42  ;;  %v464_v44 = vmul.f32 %v1697_v41, %v463_v39 }
 0x181   :  { %v465_v45 = vadd.f32 %v1695_v35, %v464_v44 }
 0x182   :  { %v330_v46 = vpop.permute.xlu1 %329 }
 0x183   :  { %348 = vst.msk [vmem:[#allocation4 + $0xa] sm:$0x3] %vm31_vm0, %v330_v46  ;;  %v473_v47 = vrot.slane %v465_v45, %v1991_v43  ;;  %1556 = vmatmul.mubr.msk.f32.vlgmr.msra.gmra.mrb[2].mxu0 %vm98_vm2, %v465_v45 }
 0x184   :  { %1652 = vmatpush3.bf16.msra.mxu0 %v1859_v12  ;;  %1577 = vmatprep.mubr.msk.f32.mxu0 %vm1794_vm1, %v1795_v37 }
 0x185   :  { %v474_v40 = vcombine.high %v473_v47, %v473_v47  ;;  %v481_v19 = vrot.slane %v473_v47, %v1991_v43  ;;  %1653 = vmatprep.subr.bf16.mxu0 %v1792_v5 }
 0x186   :  { %v300_v48 = vpop.permute.xlu1 %299 }
 0x187   :  { %v488_v49 = vrot.slane %v474_v40, %v1991_v43  ;;  %492 = vst.msk [vmem:[%s2162_s6] sm:$0x1] %vm491_vm3, %v481_v19 }
 0x188   :  { %317 = vst.msk [vmem:[#allocation3 + $0xc] sm:$0x3] %vm31_vm0, %v300_v48  ;;  %1655 = vmatpush3.bf16.msra.mxu0 %v1901_v31 }
 0x189   :  { %493 = vst.msk [vmem:[%s2162_s6 + $0x8] sm:$0x1] %vm491_vm3, %v488_v49  ;;  %1662 = vmatprep.subr.bf16.mxu0 %v1792_v5 }
 0x18a   :  { %v332_v50 = vpop.permute.xlu1 %331 }
 0x18b   :  { %349 = vst.msk [vmem:[#allocation4 + $0xc] sm:$0x3] %vm31_vm0, %v332_v50 }
 0x18e   :  { %v302_v51 = vpop.permute.xlu1 %301 }
 0x18f   :  { %318 = vst.msk [vmem:[#allocation3 + $0xe] sm:$0x3] %vm31_vm0, %v302_v51 }
 0x192   :  { %v334_v52 = vpop.permute.xlu1 %333 }
 0x193   :  { %350 = vst.msk [vmem:[#allocation4 + $0xe] sm:$0x3] %vm31_vm0, %v334_v52 }
 0x256   :  { %v562_v54 = vpop.f32.mrb[2].mxu0 }
 0x257   :  { %578 = vrot.lane.b32.xlu0 %v562_v54, %s1797_s12  ;;  %v1557_v55 = vpop.f32.mrb[3].mxu0  ;;  %v590_v56 = vadd.f32 %v562_v54, %v1943_v53  ;;  %v568_v58 = vadd.f32 %v567_v57, %v562_v54 }
 0x258   :  { %v835_v55 = vld [vmem:[#allocation2 + $0x6] sm:$0x3] }
 0x259   :  { %v1459_v59 = vmul.f32 -1.442695, %v568_v58 }
 0x25b   :  { %592 = vrot.lane.b32.xlu0 %v590_v56, %s1796_s1  ;;  %1698 = vpow2.f32 %v1459_v59 }
 0x265   :  { %v1699_v60 = vpop.eup %1698 }
 0x266   :  { %v572_v61 = vadd.f32 1.0, %v1699_v60  ;;  %v844_v60 = vld [vmem:[#allocation3 + $0x6] sm:$0x3] }
 0x268   :  { %1700 = vrcp.f32 %v572_v61 }
 0x272   :  { %v1701_v3 = vpop.eup %1700 }
 0x2c9   :  { %v579_v63 = vpop.permute.xlu0 %578 }
 0x2ca   :  { %v581_v0 = vadd.f32 %v579_v63, %v576_v62 }
 0x2cc   :  { %v1460_v1 = vmul.f32 -1.442695, %v581_v0 }
 0x2cd   :  { %v593_v2 = vpop.permute.xlu0 %592 }
 0x2ce   :  { %1702 = vpow2.f32 %v1460_v1  ;;  %v595_v4 = vmul.f32 %v1701_v3, %v593_v2  ;;  %v857_v3 = vld [vmem:[#allocation4 + $0x6] sm:$0x3] }
 0x2d0   :  { %v596_v7 = vadd.f32 %v595_v4, %v589_v6 }
 0x2d2   :  { %1704 = vtanh.f32 %v596_v7 }
 0x2d8   :  { %v1703_v8 = vpop.eup %1702 }
 0x2d9   :  { %v585_v9 = vadd.f32 1.0, %v1703_v8 }
 0x2db   :  { %1706 = vrcp.f32 %v585_v9 }
 0x2dc   :  { %v1705_v10 = vpop.eup %1704 }
 0x2dd   :  { %v598_v11 = vsub.f32 %v465_v45, %v1705_v10 }
 0x2e5   :  { %v1707_v13 = vpop.eup %1706 }
 0x2e6   :  { %v599_v14 = vmul.f32 %v1707_v13, %v598_v11 }
 0x2e8   :  { %v600_v15 = vadd.f32 %v1705_v10, %v599_v14 }
 0x2ea   :  { %v608_v16 = vrot.slane %v600_v15, %v1991_v43  ;;  %1567 = vmatmul.mubr.msk.f32.vlgmr.msra.gmra.mrb[2].mxu1 %vm98_vm2, %v600_v15 }
 0x2eb   :  { %1658 = vmatpush3.bf16.msra.mxu1 %v1859_v12  ;;  %1588 = vmatprep.mubr.msk.f32.mxu1 %vm1794_vm1, %v1795_v37 }
 0x2ec   :  { %v609_v17 = vcombine.high %v608_v16, %v608_v16  ;;  %v616_v18 = vrot.slane %v608_v16, %v1991_v43  ;;  %1659 = vmatprep.subr.bf16.mxu1 %v1792_v5 }
 0x2ee   :  { %v623_v20 = vrot.slane %v609_v17, %v1991_v43  ;;  %626 = vst.msk [vmem:[%s2162_s6 + $0x1] sm:$0x1] %vm491_vm3, %v616_v18 }
 0x2ef   :  { %1661 = vmatpush3.bf16.msra.mxu1 %v1901_v31 }
 0x2f0   :  { %627 = vst.msk [vmem:[%s2162_s6 + $0x9] sm:$0x1] %vm491_vm3, %v623_v20  ;;  %1668 = vmatprep.subr.bf16.mxu1 %v1792_v5 }
 0x3bd   :  { %v696_v21 = vpop.f32.mrb[2].mxu1 }
 0x3be   :  { %712 = vrot.lane.b32.xlu0 %v696_v21, %s1797_s12  ;;  %v1568_v22 = vpop.f32.mrb[3].mxu1  ;;  %v724_v23 = vadd.f32 %v696_v21, %v1943_v53  ;;  %v702_v25 = vadd.f32 %v701_v24, %v696_v21 }
 0x3bf   :  { %v969_v22 = vld [vmem:[#allocation2 + $0x8] sm:$0x3] }
 0x3c0   :  { %v1462_v26 = vmul.f32 -1.442695, %v702_v25 }
 0x3c2   :  { %726 = vrot.lane.b32.xlu0 %v724_v23, %s1796_s1  ;;  %1708 = vpow2.f32 %v1462_v26 }
 0x3cc   :  { %v1709_v27 = vpop.eup %1708 }
 0x3cd   :  { %v706_v28 = vadd.f32 1.0, %v1709_v27  ;;  %v978_v27 = vld [vmem:[#allocation3 + $0x8] sm:$0x3] }
 0x3cf   :  { %1710 = vrcp.f32 %v706_v28 }
 0x3d9   :  { %v1711_v35 = vpop.eup %1710 }
 0x430   :  { %v713_v30 = vpop.permute.xlu0 %712 }
 0x431   :  { %v715_v32 = vadd.f32 %v713_v30, %v710_v29 }
 0x433   :  { %v1463_v33 = vmul.f32 -1.442695, %v715_v32 }
 0x434   :  { %v727_v34 = vpop.permute.xlu0 %726 }
 0x435   :  { %1712 = vpow2.f32 %v1463_v33  ;;  %v729_v36 = vmul.f32 %v1711_v35, %v727_v34  ;;  %v991_v35 = vld [vmem:[#allocation4 + $0x8] sm:$0x3] }
 0x437   :  { %v730_v39 = vadd.f32 %v729_v36, %v723_v38 }
 0x439   :  { %1714 = vtanh.f32 %v730_v39 }
 0x43f   :  { %v1713_v41 = vpop.eup %1712 }
 0x440   :  { %v719_v42 = vadd.f32 1.0, %v1713_v41 }
 0x442   :  { %1716 = vrcp.f32 %v719_v42 }
 0x443   :  { %v1715_v44 = vpop.eup %1714 }
 0x444   :  { %v732_v45 = vsub.f32 %v600_v15, %v1715_v44 }
 0x44c   :  { %v1717_v46 = vpop.eup %1716 }
 0x44d   :  { %v733_v47 = vmul.f32 %v1717_v46, %v732_v45 }
 0x44f   :  { %v734_v40 = vadd.f32 %v1715_v44, %v733_v47 }
 0x451   :  { %v742_v19 = vrot.slane %v734_v40, %v1991_v43  ;;  %1578 = vmatmul.mubr.msk.f32.vlgmr.msra.gmra.mrb[4].mxu0 %vm98_vm2, %v734_v40 }
 0x452   :  { %1664 = vmatpush3.bf16.msra.mxu0 %v1859_v12  ;;  %1599 = vmatprep.mubr.msk.f32.mxu0 %vm1794_vm1, %v1795_v37 }
 0x453   :  { %v743_v48 = vcombine.high %v742_v19, %v742_v19  ;;  %v750_v49 = vrot.slane %v742_v19, %v1991_v43  ;;  %1665 = vmatprep.subr.bf16.mxu0 %v1792_v5 }
 0x455   :  { %v757_v50 = vrot.slane %v743_v48, %v1991_v43  ;;  %760 = vst.msk [vmem:[%s2162_s6 + $0x2] sm:$0x1] %vm491_vm3, %v750_v49  ;;  %v1103_v49 = vld [vmem:[#allocation2 + $0xa] sm:$0x3] }
 0x456   :  { %1667 = vmatpush3.bf16.msra.mxu0 %v1901_v31 }
 0x457   :  { %761 = vst.msk [vmem:[%s2162_s6 + $0xa] sm:$0x1] %vm491_vm3, %v757_v50  ;;  %1674 = vmatprep.subr.bf16.mxu0 %v1792_v5 }
 0x524   :  { %v830_v51 = vpop.f32.mrb[4].mxu0 }
 0x525   :  { %846 = vrot.lane.b32.xlu0 %v830_v51, %s1797_s12  ;;  %v1579_v52 = vpop.f32.mrb[5].mxu0  ;;  %v858_v54 = vadd.f32 %v830_v51, %v1943_v53  ;;  %v836_v56 = vadd.f32 %v835_v55, %v830_v51 }
 0x527   :  { %v1465_v57 = vmul.f32 -1.442695, %v836_v56 }
 0x529   :  { %860 = vrot.lane.b32.xlu0 %v858_v54, %s1796_s1  ;;  %1718 = vpow2.f32 %v1465_v57 }
 0x533   :  { %v1719_v58 = vpop.eup %1718 }
 0x534   :  { %v840_v59 = vadd.f32 1.0, %v1719_v58 }
 0x536   :  { %1720 = vrcp.f32 %v840_v59 }
 0x540   :  { %v1721_v1 = vpop.eup %1720 }
 0x597   :  { %v847_v61 = vpop.permute.xlu0 %846 }
 0x598   :  { %v849_v62 = vadd.f32 %v847_v61, %v844_v60  ;;  %v1125_v61 = vld [vmem:[#allocation4 + $0xa] sm:$0x3] }
 0x59a   :  { %v1466_v63 = vmul.f32 -1.442695, %v849_v62 }
 0x59b   :  { %v861_v0 = vpop.permute.xlu0 %860 }
 0x59c   :  { %1722 = vpow2.f32 %v1466_v63  ;;  %v863_v2 = vmul.f32 %v1721_v1, %v861_v0 }
 0x59e   :  { %v864_v4 = vadd.f32 %v863_v2, %v857_v3 }
 0x5a0   :  { %1724 = vtanh.f32 %v864_v4 }
 0x5a6   :  { %v1723_v6 = vpop.eup %1722 }
 0x5a7   :  { %v853_v7 = vadd.f32 1.0, %v1723_v6 }
 0x5a9   :  { %1726 = vrcp.f32 %v853_v7 }
 0x5aa   :  { %v1725_v8 = vpop.eup %1724 }
 0x5ab   :  { %v866_v9 = vsub.f32 %v734_v40, %v1725_v8 }
 0x5b3   :  { %v1727_v10 = vpop.eup %1726 }
 0x5b4   :  { %v867_v11 = vmul.f32 %v1727_v10, %v866_v9 }
 0x5b6   :  { %v868_v13 = vadd.f32 %v1725_v8, %v867_v11 }
 0x5b8   :  { %v876_v14 = vrot.slane %v868_v13, %v1991_v43  ;;  %1589 = vmatmul.mubr.msk.f32.vlgmr.msra.gmra.mrb[4].mxu1 %vm98_vm2, %v868_v13 }
 0x5b9   :  { %1670 = vmatpush3.bf16.msra.mxu1 %v1859_v12  ;;  %1610 = vmatprep.mubr.msk.f32.mxu1 %vm1794_vm1, %v1795_v37 }
 0x5ba   :  { %v877_v15 = vcombine.high %v876_v14, %v876_v14  ;;  %v884_v16 = vrot.slane %v876_v14, %v1991_v43  ;;  %1671 = vmatprep.subr.bf16.mxu1 %v1792_v5 }
 0x5bc   :  { %v891_v17 = vrot.slane %v877_v15, %v1991_v43  ;;  %894 = vst.msk [vmem:[%s2162_s6 + $0x3] sm:$0x1] %vm491_vm3, %v884_v16  ;;  %v1237_v15 = vld [vmem:[#allocation2 + $0xc] sm:$0x3] }
 0x5bd   :  { %1673 = vmatpush3.bf16.msra.mxu1 %v1901_v31 }
 0x5be   :  { %895 = vst.msk [vmem:[%s2162_s6 + $0xb] sm:$0x1] %vm491_vm3, %v891_v17 }
 0x68b   :  { %v964_v18 = vpop.f32.mrb[4].mxu1 }
 0x68c   :  { %980 = vrot.lane.b32.xlu0 %v964_v18, %s1797_s12  ;;  %v1590_v20 = vpop.f32.mrb[5].mxu1  ;;  %v992_v21 = vadd.f32 %v964_v18, %v1943_v53  ;;  %v970_v23 = vadd.f32 %v969_v22, %v964_v18 }
 0x68e   :  { %v1468_v24 = vmul.f32 -1.442695, %v970_v23 }
 0x690   :  { %994 = vrot.lane.b32.xlu0 %v992_v21, %s1796_s1  ;;  %1728 = vpow2.f32 %v1468_v24  ;;  %v1246_v21 = vld [vmem:[#allocation3 + $0xc] sm:$0x3] }
 0x69a   :  { %v1729_v25 = vpop.eup %1728 }
 0x69b   :  { %v974_v26 = vadd.f32 1.0, %v1729_v25 }
 0x69d   :  { %1730 = vrcp.f32 %v974_v26 }
 0x6a7   :  { %v1731_v33 = vpop.eup %1730 }
 0x6fe   :  { %v981_v28 = vpop.permute.xlu0 %980 }
 0x6ff   :  { %v983_v29 = vadd.f32 %v981_v28, %v978_v27  ;;  %v1259_v28 = vld [vmem:[#allocation4 + $0xc] sm:$0x3] }
 0x701   :  { %v1469_v30 = vmul.f32 -1.442695, %v983_v29 }
 0x702   :  { %v995_v32 = vpop.permute.xlu0 %994 }
 0x703   :  { %1732 = vpow2.f32 %v1469_v30  ;;  %v997_v34 = vmul.f32 %v1731_v33, %v995_v32 }
 0x705   :  { %v998_v36 = vadd.f32 %v997_v34, %v991_v35 }
 0x707   :  { %1734 = vtanh.f32 %v998_v36 }
 0x70d   :  { %v1733_v38 = vpop.eup %1732 }
 0x70e   :  { %v987_v39 = vadd.f32 1.0, %v1733_v38 }
 0x710   :  { %1736 = vrcp.f32 %v987_v39 }
 0x711   :  { %v1735_v41 = vpop.eup %1734 }
 0x712   :  { %v1000_v42 = vsub.f32 %v868_v13, %v1735_v41 }
 0x71a   :  { %v1737_v44 = vpop.eup %1736 }
 0x71b   :  { %v1001_v45 = vmul.f32 %v1737_v44, %v1000_v42 }
 0x71d   :  { %v1002_v46 = vadd.f32 %v1735_v41, %v1001_v45 }
 0x71f   :  { %v1010_v47 = vrot.slane %v1002_v46, %v1991_v43  ;;  %1600 = vmatmul.mubr.msk.f32.vlgmr.msra.gmra.mrb[6].mxu0 %vm98_vm2, %v1002_v46 }
 0x720   :  { %1676 = vmatpush3.bf16.msra.mxu0 %v1859_v12  ;;  %1621 = vmatprep.mubr.msk.f32.mxu0 %vm1794_vm1, %v1795_v37 }
 0x721   :  { %v1011_v40 = vcombine.high %v1010_v47, %v1010_v47  ;;  %v1018_v19 = vrot.slane %v1010_v47, %v1991_v43  ;;  %1677 = vmatprep.subr.bf16.mxu0 %v1792_v5 }
 0x723   :  { %v1025_v48 = vrot.slane %v1011_v40, %v1991_v43  ;;  %1028 = vst.msk [vmem:[%s2162_s6 + $0x4] sm:$0x1] %vm491_vm3, %v1018_v19  ;;  %v1371_v40 = vld [vmem:[#allocation2 + $0xe] sm:$0x3] }
 0x724   :  { %1679 = vmatpush3.bf16.msra.mxu0 %v1901_v31  ;;  %v1112_v31 = vld [vmem:[#allocation3 + $0xa] sm:$0x3] }
 0x725   :  { %1029 = vst.msk [vmem:[%s2162_s6 + $0xc] sm:$0x1] %vm491_vm3, %v1025_v48 }
 0x7f2   :  { %v1098_v12 = vpop.f32.mrb[6].mxu0 }
 0x7f3   :  { %1114 = vrot.lane.b32.xlu0 %v1098_v12, %s1797_s12  ;;  %v1601_v37 = vpop.f32.mrb[7].mxu0  ;;  %v1126_v5 = vadd.f32 %v1098_v12, %v1943_v53  ;;  %v1104_v50 = vadd.f32 %v1103_v49, %v1098_v12 }
 0x7f5   :  { %v1471_v51 = vmul.f32 -1.442695, %v1104_v50 }
 0x7f7   :  { %1128 = vrot.lane.b32.xlu0 %v1126_v5, %s1796_s1  ;;  %1738 = vpow2.f32 %v1471_v51  ;;  %v1380_v5 = vld [vmem:[#allocation3 + $0xe] sm:$0x3] }
 0x801   :  { %v1739_v52 = vpop.eup %1738 }
 0x802   :  { %v1108_v54 = vadd.f32 1.0, %v1739_v52 }
 0x804   :  { %1740 = vrcp.f32 %v1108_v54 }
 0x80e   :  { %v1741_v59 = vpop.eup %1740 }
 0x865   :  { %v1115_v55 = vpop.permute.xlu0 %1114 }
 0x866   :  { %v1117_v56 = vadd.f32 %v1115_v55, %v1112_v31  ;;  %v1393_v55 = vld [vmem:[#allocation4 + $0xe] sm:$0x3] }
 0x868   :  { %v1472_v57 = vmul.f32 -1.442695, %v1117_v56 }
 0x869   :  { %v1129_v58 = vpop.permute.xlu0 %1128 }
 0x86a   :  { %1742 = vpow2.f32 %v1472_v57  ;;  %v1131_v60 = vmul.f32 %v1741_v59, %v1129_v58 }
 0x86c   :  { %v1132_v62 = vadd.f32 %v1131_v60, %v1125_v61 }
 0x86e   :  { %1744 = vtanh.f32 %v1132_v62 }
 0x874   :  { %v1743_v63 = vpop.eup %1742 }
 0x875   :  { %v1121_v0 = vadd.f32 1.0, %v1743_v63 }
 0x877   :  { %1746 = vrcp.f32 %v1121_v0 }
 0x878   :  { %v1745_v1 = vpop.eup %1744 }
 0x879   :  { %v1134_v2 = vsub.f32 %v1002_v46, %v1745_v1 }
 0x881   :  { %v1747_v3 = vpop.eup %1746 }
 0x882   :  { %v1135_v4 = vmul.f32 %v1747_v3, %v1134_v2 }
 0x884   :  { %v1136_v6 = vadd.f32 %v1745_v1, %v1135_v4 }
 0x886   :  { %v1144_v7 = vrot.slane %v1136_v6, %v1991_v43  ;;  %1611 = vmatmul.mubr.msk.f32.vlgmr.msra.gmra.mrb[6].mxu1 %vm98_vm2, %v1136_v6 }
 0x888   :  { %v1145_v8 = vcombine.high %v1144_v7, %v1144_v7  ;;  %v1152_v9 = vrot.slane %v1144_v7, %v1991_v43 }
 0x88a   :  { %v1159_v10 = vrot.slane %v1145_v8, %v1991_v43  ;;  %1162 = vst.msk [vmem:[%s2162_s6 + $0x5] sm:$0x1] %vm491_vm3, %v1152_v9 }
 0x88c   :  { %1163 = vst.msk [vmem:[%s2162_s6 + $0xd] sm:$0x1] %vm491_vm3, %v1159_v10 }
 0x959   :  { %v1232_v11 = vpop.f32.mrb[6].mxu1 }
 0x95a   :  { %1248 = vrot.lane.b32.xlu0 %v1232_v11, %s1797_s12  ;;  %v1612_v13 = vpop.f32.mrb[7].mxu1  ;;  %v1260_v14 = vadd.f32 %v1232_v11, %v1943_v53  ;;  %v1238_v16 = vadd.f32 %v1237_v15, %v1232_v11 }
 0x95c   :  { %v1474_v17 = vmul.f32 -1.442695, %v1238_v16 }
 0x95e   :  { %1262 = vrot.lane.b32.xlu0 %v1260_v14, %s1796_s1  ;;  %1748 = vpow2.f32 %v1474_v17 }
 0x968   :  { %v1749_v18 = vpop.eup %1748 }
 0x969   :  { %v1242_v20 = vadd.f32 1.0, %v1749_v18 }
 0x96b   :  { %1750 = vrcp.f32 %v1242_v20 }
 0x975   :  { %v1751_v26 = vpop.eup %1750 }
 0x9cc   :  { %v1249_v22 = vpop.permute.xlu0 %1248 }
 0x9cd   :  { %v1251_v23 = vadd.f32 %v1249_v22, %v1246_v21 }
 0x9cf   :  { %v1475_v24 = vmul.f32 -1.442695, %v1251_v23 }
 0x9d0   :  { %v1263_v25 = vpop.permute.xlu0 %1262 }
 0x9d1   :  { %1752 = vpow2.f32 %v1475_v24  ;;  %v1265_v27 = vmul.f32 %v1751_v26, %v1263_v25 }
 0x9d3   :  { %v1266_v29 = vadd.f32 %v1265_v27, %v1259_v28 }
 0x9d5   :  { %1754 = vtanh.f32 %v1266_v29 }
 0x9db   :  { %v1753_v30 = vpop.eup %1752 }
 0x9dc   :  { %v1255_v32 = vadd.f32 1.0, %v1753_v30 }
 0x9de   :  { %1756 = vrcp.f32 %v1255_v32 }
 0x9df   :  { %v1755_v33 = vpop.eup %1754 }
 0x9e0   :  { %v1268_v34 = vsub.f32 %v1136_v6, %v1755_v33 }
 0x9e8   :  { %v1757_v35 = vpop.eup %1756 }
 0x9e9   :  { %v1269_v36 = vmul.f32 %v1757_v35, %v1268_v34 }
 0x9eb   :  { %v1270_v38 = vadd.f32 %v1755_v33, %v1269_v36 }
 0x9ed   :  { %v1278_v39 = vrot.slane %v1270_v38, %v1991_v43  ;;  %1622 = vmatmul.mubr.msk.f32.vlgmr.msra.gmra.mrb[8].mxu0 %vm98_vm2, %v1270_v38 }
 0x9ef   :  { %v1279_v41 = vcombine.high %v1278_v39, %v1278_v39  ;;  %v1286_v42 = vrot.slane %v1278_v39, %v1991_v43 }
 0x9f1   :  { %v1293_v44 = vrot.slane %v1279_v41, %v1991_v43  ;;  %1296 = vst.msk [vmem:[%s2162_s6 + $0x6] sm:$0x1] %vm491_vm3, %v1286_v42 }
 0x9f3   :  { %1297 = vst.msk [vmem:[%s2162_s6 + $0xe] sm:$0x1] %vm491_vm3, %v1293_v44 }
 0xac0   :  { %v1366_v45 = vpop.f32.mrb[8].mxu0 }
 0xac1   :  { %1382 = vrot.lane.b32.xlu0 %v1366_v45, %s1797_s12  ;;  %v1623_v46 = vpop.f32.mrb[9].mxu0  ;;  %v1394_v47 = vadd.f32 %v1366_v45, %v1943_v53  ;;  %v1372_v19 = vadd.f32 %v1371_v40, %v1366_v45 }
 0xac3   :  { %v1477_v48 = vmul.f32 -1.442695, %v1372_v19 }
 0xac5   :  { %1396 = vrot.lane.b32.xlu0 %v1394_v47, %s1796_s1  ;;  %1758 = vpow2.f32 %v1477_v48  ;;  %s1799_s1 = smov [#allocation5]  }
 0xac6   :  { %s1441_s12 = sshll.u32 %s1799_s1, 4  ;;  %s1442_s12 = int_to_ptr.vmem [resolvable:$true] %s1441_s12 }
 0xac7   :  { %s1768_s13 = scalar_lea.vmem %s1442_s12, 32  ;;  %p1773_p1 = scmp.lt.s32.totalorder %s1442_s12, %s1442_s12 }
 0xac8   :  { %p1769_p0 = scmp.ne.s32.totalorder %s1442_s12, %s1768_s13  ;;  %p1774_p2 = scmp.lt.s32.totalorder %s1768_s13, %s1768_s13 }
 0xaca   :  { %p1775_p3 = por %p1774_p2, %p1773_p1 }
 0xacc   :  { %p1776_p4 = pnand %p1775_p3, %p1769_p0 }
 0xacf   :  { %v1759_v12 = vpop.eup %1758 }
 0xad0   :  { %v1376_v37 = vadd.f32 1.0, %v1759_v12 }
 0xad2   :  { %1760 = vrcp.f32 %v1376_v37 }
 0xadc   :  { %v1761_v54 = vpop.eup %1760 }
 0xb33   :  { %v1383_v49 = vpop.permute.xlu0 %1382 }
 0xb34   :  { %v1385_v50 = vadd.f32 %v1383_v49, %v1380_v5 }
 0xb36   :  { %v1478_v51 = vmul.f32 -1.442695, %v1385_v50 }
 0xb37   :  { %v1397_v52 = vpop.permute.xlu0 %1396 }
 0xb38   :  { %1762 = vpow2.f32 %v1478_v51  ;;  %v1399_v31 = vmul.f32 %v1761_v54, %v1397_v52 }
 0xb3a   :  { %v1400_v56 = vadd.f32 %v1399_v31, %v1393_v55 }
 0xb3c   :  { %1764 = vtanh.f32 %v1400_v56 }
 0xb42   :  { %v1763_v53 = vpop.eup %1762 }
 0xb43   :  { %v1389_v57 = vadd.f32 1.0, %v1763_v53 }
 0xb45   :  { %1766 = vrcp.f32 %v1389_v57 }
 0xb46   :  { %v1765_v58 = vpop.eup %1764 }
 0xb47   :  { %v1402_v59 = vsub.f32 %v1270_v38, %v1765_v58 }
 0xb4f   :  { %v1767_v60 = vpop.eup %1766 }
 0xb50   :  { %v1403_v61 = vmul.f32 %v1767_v60, %v1402_v59 }
 0xb52   :  { %v1404_v62 = vadd.f32 %v1765_v58, %v1403_v61 }
 0xb54   :  { %v1412_v63 = vrot.slane %v1404_v62, %v1991_v43  ;;  %1432 = vst.msk [vmem:[#allocation5] sm:$0x3] %vm31_vm0, %v1404_v62 }
 0xb55   :  { %1779 = shalt.err (!%p1776_p4)
}
 0xb56   :  { %s1780_s16 = scalar_lea.hbm %s2163_s7, 32 }
 0xb57   :  { %p1781_p5 = scmp.ne.s32.totalorder %s2163_s7, %s1780_s16  ;;  %p1784_p6 = scmp.lt.u32.totalorder %s1780_s16, %s2163_s7 }
 0xb59   :  { %p1786_p7 = pnand %p1784_p6, %p1781_p5 }
 0xb5b   :  { %1789 = shalt.err (!%p1786_p7)
}
 0xb5c   :  { %1444 = dma.vmem_to_hbm [thread:$0]  %s1442_s12, 32, %s2163_s7, [#allocation6]   ;;  %v1413_v0 = vcombine.high %v1412_v63, %v1412_v63  ;;  %v1420_v1 = vrot.slane %v1412_v63, %v1991_v43 }
 0xb5e   :  { %v1427_v2 = vrot.slane %v1413_v0, %v1991_v43  ;;  %1430 = vst.msk [vmem:[%s2162_s6 + $0x7] sm:$0x1] %vm491_vm3, %v1420_v1 }
 0xb60   :  { %1431 = vst.msk [vmem:[%s2162_s6 + $0xf] sm:$0x1] %vm491_vm3, %v1427_v2 }
 0xb61   :  { %1790 = dma.done.wait [#allocation6], 32  }
 0xb62   :  { %1791 = vsyncadd [#allocation6], 4294967264 }
 0xb63   :  { %1450 = vsyncpa [#allocation6], 1 }

</bundles_post_ra>
